<compile_context>
chip_gen: v7x
topology: tpu7x:2x2x1
jax: 0.10.0
libtpu: 0.0.40
codegen_flags: <defaults>
</compile_context>

<pallas_src>
import functools

import numpy as np
import jax
import jax.numpy as jnp
from jax import lax
from jax.experimental import pallas as pl
from jax.experimental.pallas import tpu as pltpu


# ----------------------------------------------------------------------------
# Fused per-sample kernel
# ----------------------------------------------------------------------------
def _q3_kernel(x_ref, B_ref, b1_ref, C_ref, b2_ref, wpf_ref, bf1_ref,
               wf2_ref, bf2_ref, wf3_ref, bf3_ref, o_ref):
    f32 = jnp.float32
    mm = functools.partial(jnp.dot, preferred_element_type=f32)

    # ---- conv1(5x5, pad 2) + avgpool(2x2) fused into a 6x6/stride-2 conv,
    # lowered as 6 MXU GEMMs over the fused-kernel rows.
    # p1[ph, pw*8 + c] = pooled conv1 activation at (ph, pw), channel c.
    acc1 = jnp.zeros((14, 128), f32)
    for i in range(6):
        rows = x_ref[pl.ds(i, 14, stride=2), :]          # x[2*ph + i, :], (14, 32)
        acc1 = acc1 + mm(rows, B_ref[i])                  # (14, 128)
    p1 = acc1 + b1_ref[...]

    # ---- conv2(5x5, valid): 5 MXU GEMMs over kernel rows.
    # y2[oh, ow*16 + co] = conv2 output at (oh, ow), out-channel co.
    acc2 = jnp.zeros((10, 256), f32)
    for i in range(5):
        acc2 = acc2 + mm(p1[i:i + 10, :], C_ref[i])       # (10, 256)
    y2 = acc2 + b2_ref[...]

    # ---- avgpool2 vertical pair-sum in registers; horizontal pair-sum +
    # torch Flatten permutation + fc1 weights are folded into wpf (done once
    # in prepare_params): 5 GEMMs of (1,256)@(256,128).
    h1 = bf1_ref[...]                                     # (1, 128)
    for k in range(5):
        row = y2[2 * k:2 * k + 1, :] + y2[2 * k + 1:2 * k + 2, :]
        h1 = h1 + mm(row, wpf_ref[k])

    # ---- fc2, fc3 (zero-padded 128x128 GEMMs keep them exact)
    h2 = mm(h1, wf2_ref[...]) + bf2_ref[...]
    h3 = mm(h2, wf3_ref[...]) + bf3_ref[...]

    # ---- softmax(dim=1) over the 10 valid lanes; exact divide; lane-dense store
    lane = lax.broadcasted_iota(jnp.int32, (1, 128), 1)
    valid = lane < 10
    masked = jnp.where(valid, h3, -1e30)
    m = jnp.max(masked, axis=1, keepdims=True)
    e = jnp.where(valid, jnp.exp(masked - m), 0.0)
    o_ref[...] = e / jnp.sum(e, axis=1, keepdims=True)


# ----------------------------------------------------------------------------
# Wrapper
# ----------------------------------------------------------------------------
def q3model_forward(prepped, x):
    """x: (N, 1, 28, 28) float32 -> (N, 10) softmax probabilities."""
    n = x.shape[0]
    xp = jnp.pad(x.astype(jnp.float32)[:, 0, :, :],
                 ((0, 0), (2, 2), (2, 2)))                # (N, 32, 32)

    args = (xp, prepped["B"], prepped["b1t"], prepped["C"], prepped["b2t"],
            prepped["Wpf"], prepped["bf1"], prepped["Wf2"], prepped["bf2"],
            prepped["Wf3"], prepped["bf3"])

    def const_spec(a):
        r = len(a.shape)
        return pl.BlockSpec(a.shape, lambda i, _r=r: (0,) * _r)

    in_specs = [pl.BlockSpec((None, 32, 32), lambda i: (i, 0, 0))]
    in_specs += [const_spec(a) for a in args[1:]]
    out_specs = pl.BlockSpec((None, 1, 128), lambda i: (i, 0, 0))

    param_bytes = sum(int(a.size) * 4 for a in args[1:])
    res = pl.pallas_call(
        _q3_kernel,
        grid=(n,),
        in_specs=in_specs,
        out_specs=out_specs,
        out_shape=jax.ShapeDtypeStruct((n, 1, 128), jnp.float32),
        compiler_params=pltpu.CompilerParams(
            dimension_semantics=("parallel",),
            vmem_limit_bytes=32 * 1024 * 1024),
        cost_estimate=pl.CostEstimate(
            flops=n * 839_344, transcendentals=n * 10,
            bytes_accessed=param_bytes + n * (32 * 32 + 128) * 4),
    )(*args)
    return res[:, 0, :10]


# ----------------------------------------------------------------------------
# Parameters: torch layout at init, repacked ONCE into kernel layouts
# ----------------------------------------------------------------------------
def init_params(key):
    ks = jax.random.split(key, 10)
    s = 0.05
    return {
        "conv1_w": jax.random.normal(ks[0], (6, 1, 5, 5), jnp.float32) * s,
        "conv1_b": jax.random.normal(ks[1], (6,), jnp.float32) * s,
        "conv2_w": jax.random.normal(ks[2], (16, 6, 5, 5), jnp.float32) * s,
        "conv2_b": jax.random.normal(ks[3], (16,), jnp.float32) * s,
        "fc1_w": jax.random.normal(ks[4], (120, 400), jnp.float32) * s,
        "fc1_b": jax.random.normal(ks[5], (120,), jnp.float32) * s,
        "fc2_w": jax.random.normal(ks[6], (84, 120), jnp.float32) * s,
        "fc2_b": jax.random.normal(ks[7], (84,), jnp.float32) * s,
        "fc3_w": jax.random.normal(ks[8], (10, 84), jnp.float32) * s,
        "fc3_b": jax.random.normal(ks[9], (10,), jnp.float32) * s,
    }


def prepare_params(p):
    """One-time repack of torch-layout weights into lane-dense kernel layouts."""
    w1 = np.asarray(p["conv1_w"])[:, 0]                   # (6, 5, 5)
    b1 = np.asarray(p["conv1_b"])
    w2 = np.asarray(p["conv2_w"])                         # (16, 6, 5, 5)
    b2 = np.asarray(p["conv2_b"])
    f1w = np.asarray(p["fc1_w"]); f1b = np.asarray(p["fc1_b"])
    f2w = np.asarray(p["fc2_w"]); f2b = np.asarray(p["fc2_b"])
    f3w = np.asarray(p["fc3_w"]); f3b = np.asarray(p["fc3_b"])

    # conv1 o avgpool(2,2)  ==  6x6 / stride-2 conv with weights w_eff.
    w_eff = np.zeros((6, 6, 6), np.float32)
    for dh in (0, 1):
        for dw in (0, 1):
            w_eff[:, dh:dh + 5, dw:dw + 5] += w1
    w_eff *= 0.25

    # B[i, w_in, pw*8 + c] = w_eff[c, i, w_in - 2*pw]   (GEMM rhs per kernel row)
    B = np.zeros((6, 32, 128), np.float32)
    for i in range(6):
        for pw in range(14):
            for j in range(6):
                B[i, 2 * pw + j, pw * 8:pw * 8 + 6] = w_eff[:, i, j]
    b1t = np.zeros((1, 128), np.float32)
    for pw in range(14):
        b1t[0, pw * 8:pw * 8 + 6] = b1

    # C[i, pw*8 + ci, ow*16 + co] = w2[co, ci, i, pw - ow]
    C = np.zeros((5, 128, 256), np.float32)
    for i in range(5):
        for ow in range(10):
            for j in range(5):
                pw = ow + j
                C[i, pw * 8:pw * 8 + 6, ow * 16:ow * 16 + 16] = w2[:, :, i, j].T
    b2t = np.zeros((1, 256), np.float32)
    for ow in range(10):
        b2t[0, ow * 16:ow * 16 + 16] = b2

    # pool2 (horizontal half) + torch Flatten (index co*25 + poh*5 + pow) + fc1.
    Wpf = np.zeros((5, 256, 128), np.float32)
    for poh in range(5):
        for ow in range(10):
            for co in range(16):
                s = co * 25 + poh * 5 + (ow // 2)
                Wpf[poh, ow * 16 + co, :120] = 0.25 * f1w[:, s]
    bf1 = np.zeros((1, 128), np.float32); bf1[0, :120] = f1b

    Wf2 = np.zeros((128, 128), np.float32); Wf2[:120, :84] = f2w.T
    bf2 = np.zeros((1, 128), np.float32); bf2[0, :84] = f2b
    Wf3 = np.zeros((128, 128), np.float32); Wf3[:84, :10] = f3w.T
    bf3 = np.zeros((1, 128), np.float32); bf3[0, :10] = f3b

    packed = dict(B=B, b1t=b1t, C=C, b2t=b2t, Wpf=Wpf, bf1=bf1,
                  Wf2=Wf2, bf2=bf2, Wf3=Wf3, bf3=bf3)
    return {k: jnp.asarray(v) for k, v in packed.items()}


# ----------------------------------------------------------------------------
# Pure-JAX reference of the PyTorch module (correctness check)
# ----------------------------------------------------------------------------
def _avgpool2_ref(y):
    n, c, h, w = y.shape
    return y.reshape(n, c, h // 2, 2, w // 2, 2).mean(axis=(3, 5))


def q3model_reference(p, x):
    hi = jax.lax.Precision.HIGHEST
    y = lax.conv_general_dilated(x, p["conv1_w"], (1, 1), ((2, 2), (2, 2)),
                                 dimension_numbers=("NCHW", "OIHW", "NCHW"),
                                 precision=hi)
    y = y + p["conv1_b"][None, :, None, None]
    y = _avgpool2_ref(y)
    y = lax.conv_general_dilated(y, p["conv2_w"], (1, 1), ((0, 0), (0, 0)),
                                 dimension_numbers=("NCHW", "OIHW", "NCHW"),
                                 precision=hi)
    y = y + p["conv2_b"][None, :, None, None]
    y = _avgpool2_ref(y)
    y = y.reshape(y.shape[0], -1)
    y = jnp.dot(y, p["fc1_w"].T, precision=hi) + p["fc1_b"]
    y = jnp.dot(y, p["fc2_w"].T, precision=hi) + p["fc2_b"]
    y = jnp.dot(y, p["fc3_w"].T, precision=hi) + p["fc3_b"]
    return jax.nn.softmax(y, axis=1)


if __name__ == "__main__":
    key = jax.random.PRNGKey(0)
    k_in, k_par = jax.random.split(key)
    x = jax.random.normal(k_in, (2, 1, 28, 28), jnp.float32)   # NCHW LeNet input
    params = init_params(k_par)
    prepped = prepare_params(params)     # one-time weight repack (not per call)

    out = jax.jit(q3model_forward)(prepped, x)
    out = jax.block_until_ready(out)

    assert out.shape == (2, 10)
    # exact divide in the softmax epilogue -> rows sum to 1 up to f32 rounding
    assert jnp.allclose(jnp.sum(out, axis=1), 1.0, atol=1e-3)
    # match the pure-JAX (fp32, HIGHEST precision) reference of the torch module
    ref = q3model_reference(params, x)
    assert jnp.allclose(out, ref, atol=2e-2), float(jnp.max(jnp.abs(out - ref)))
    print("KERNEL_OK")
</pallas_src>

<mosaic_0001>
module attributes {stable_mosaic.version = 11 : i64} {
  func.func @_q3_kernel(%arg0: i32, %arg1: memref<1x32x32xf32, #tpu.memory_space<vmem>>, %arg2: memref<6x32x128xf32, #tpu.memory_space<vmem>>, %arg3: memref<1x128xf32, #tpu.memory_space<vmem>>, %arg4: memref<5x128x256xf32, #tpu.memory_space<vmem>>, %arg5: memref<1x256xf32, #tpu.memory_space<vmem>>, %arg6: memref<5x256x128xf32, #tpu.memory_space<vmem>>, %arg7: memref<1x128xf32, #tpu.memory_space<vmem>>, %arg8: memref<128x128xf32, #tpu.memory_space<vmem>>, %arg9: memref<1x128xf32, #tpu.memory_space<vmem>>, %arg10: memref<128x128xf32, #tpu.memory_space<vmem>>, %arg11: memref<1x128xf32, #tpu.memory_space<vmem>>, %arg12: memref<1x1x128xf32, #tpu.memory_space<vmem>>) attributes {dimension_semantics = [#tpu.dimension_semantics<parallel>], iteration_bounds = array<i64: 2>, scalar_prefetch = 0 : i64, scratch_operands = 0 : i64, tpu.core_type = #tpu.core_type<tc>, window_params = [{transform_indices = @transform_0, window_bounds = array<i64: 1, 32, 32>}, {pipeline_mode = #tpu.pipeline_mode<synchronous>, transform_indices = @transform_1, window_bounds = array<i64: 6, 32, 128>}, {pipeline_mode = #tpu.pipeline_mode<synchronous>, transform_indices = @transform_2, window_bounds = array<i64: 1, 128>}, {pipeline_mode = #tpu.pipeline_mode<synchronous>, transform_indices = @transform_3, window_bounds = array<i64: 5, 128, 256>}, {pipeline_mode = #tpu.pipeline_mode<synchronous>, transform_indices = @transform_4, window_bounds = array<i64: 1, 256>}, {pipeline_mode = #tpu.pipeline_mode<synchronous>, transform_indices = @transform_5, window_bounds = array<i64: 5, 256, 128>}, {pipeline_mode = #tpu.pipeline_mode<synchronous>, transform_indices = @transform_6, window_bounds = array<i64: 1, 128>}, {pipeline_mode = #tpu.pipeline_mode<synchronous>, transform_indices = @transform_7, window_bounds = array<i64: 128, 128>}, {pipeline_mode = #tpu.pipeline_mode<synchronous>, transform_indices = @transform_8, window_bounds = array<i64: 1, 128>}, {pipeline_mode = #tpu.pipeline_mode<synchronous>, transform_indices = @transform_9, window_bounds = array<i64: 128, 128>}, {pipeline_mode = #tpu.pipeline_mode<synchronous>, transform_indices = @transform_10, window_bounds = array<i64: 1, 128>}, {transform_indices = @transform_11, window_bounds = array<i64: 1, 1, 128>}]} {
    %cst = arith.constant 0.000000e+00 : f32
    %0 = vector.broadcast %cst : f32 to vector<14x128xf32>
    %c0 = arith.constant 0 : index
    %c0_0 = arith.constant 0 : index
    %c0_1 = arith.constant 0 : index
    %1 = tpu.strided_load %arg1[%c0, %c0_0, %c0_1] {strides = array<i32: 1, 2, 1>} : memref<1x32x32xf32, #tpu.memory_space<vmem>>, vector<1x14x32xf32>
    %2 = vector.shape_cast %1 : vector<1x14x32xf32> to vector<14x32xf32>
    %c0_2 = arith.constant 0 : index
    %c0_3 = arith.constant 0 : index
    %c0_4 = arith.constant 0 : index
    %3 = vector.load %arg2[%c0_2, %c0_3, %c0_4] : memref<6x32x128xf32, #tpu.memory_space<vmem>>, vector<1x32x128xf32>
    %4 = vector.shape_cast %3 : vector<1x32x128xf32> to vector<32x128xf32>
    %cst_5 = arith.constant dense<0.000000e+00> : vector<14x128xf32>
    %5 = tpu.matmul %2, %4, %cst_5 {dimension_numbers = #tpu.dot_dimension_numbers<[1], [0], [0], [1], [0, 0, 1, 1], [], []>} : vector<14x32xf32>, vector<32x128xf32>, vector<14x128xf32> -> vector<14x128xf32>
    %6 = arith.addf %0, %5 : vector<14x128xf32>
    %c0_6 = arith.constant 0 : index
    %c1 = arith.constant 1 : index
    %c0_7 = arith.constant 0 : index
    %7 = tpu.strided_load %arg1[%c0_6, %c1, %c0_7] {strides = array<i32: 1, 2, 1>} : memref<1x32x32xf32, #tpu.memory_space<vmem>>, vector<1x14x32xf32>
    %8 = vector.shape_cast %7 : vector<1x14x32xf32> to vector<14x32xf32>
    %c1_8 = arith.constant 1 : index
    %c0_9 = arith.constant 0 : index
    %c0_10 = arith.constant 0 : index
    %9 = vector.load %arg2[%c1_8, %c0_9, %c0_10] : memref<6x32x128xf32, #tpu.memory_space<vmem>>, vector<1x32x128xf32>
    %10 = vector.shape_cast %9 : vector<1x32x128xf32> to vector<32x128xf32>
    %cst_11 = arith.constant dense<0.000000e+00> : vector<14x128xf32>
    %11 = tpu.matmul %8, %10, %cst_11 {dimension_numbers = #tpu.dot_dimension_numbers<[1], [0], [0], [1], [0, 0, 1, 1], [], []>} : vector<14x32xf32>, vector<32x128xf32>, vector<14x128xf32> -> vector<14x128xf32>
    %12 = arith.addf %6, %11 : vector<14x128xf32>
    %c0_12 = arith.constant 0 : index
    %c2 = arith.constant 2 : index
    %c0_13 = arith.constant 0 : index
    %13 = tpu.strided_load %arg1[%c0_12, %c2, %c0_13] {strides = array<i32: 1, 2, 1>} : memref<1x32x32xf32, #tpu.memory_space<vmem>>, vector<1x14x32xf32>
    %14 = vector.shape_cast %13 : vector<1x14x32xf32> to vector<14x32xf32>
    %c2_14 = arith.constant 2 : index
    %c0_15 = arith.constant 0 : index
    %c0_16 = arith.constant 0 : index
    %15 = vector.load %arg2[%c2_14, %c0_15, %c0_16] : memref<6x32x128xf32, #tpu.memory_space<vmem>>, vector<1x32x128xf32>
    %16 = vector.shape_cast %15 : vector<1x32x128xf32> to vector<32x128xf32>
    %cst_17 = arith.constant dense<0.000000e+00> : vector<14x128xf32>
    %17 = tpu.matmul %14, %16, %cst_17 {dimension_numbers = #tpu.dot_dimension_numbers<[1], [0], [0], [1], [0, 0, 1, 1], [], []>} : vector<14x32xf32>, vector<32x128xf32>, vector<14x128xf32> -> vector<14x128xf32>
    %18 = arith.addf %12, %17 : vector<14x128xf32>
    %c0_18 = arith.constant 0 : index
    %c3 = arith.constant 3 : index
    %c0_19 = arith.constant 0 : index
    %19 = tpu.strided_load %arg1[%c0_18, %c3, %c0_19] {strides = array<i32: 1, 2, 1>} : memref<1x32x32xf32, #tpu.memory_space<vmem>>, vector<1x14x32xf32>
    %20 = vector.shape_cast %19 : vector<1x14x32xf32> to vector<14x32xf32>
    %c3_20 = arith.constant 3 : index
    %c0_21 = arith.constant 0 : index
    %c0_22 = arith.constant 0 : index
    %21 = vector.load %arg2[%c3_20, %c0_21, %c0_22] : memref<6x32x128xf32, #tpu.memory_space<vmem>>, vector<1x32x128xf32>
    %22 = vector.shape_cast %21 : vector<1x32x128xf32> to vector<32x128xf32>
    %cst_23 = arith.constant dense<0.000000e+00> : vector<14x128xf32>
    %23 = tpu.matmul %20, %22, %cst_23 {dimension_numbers = #tpu.dot_dimension_numbers<[1], [0], [0], [1], [0, 0, 1, 1], [], []>} : vector<14x32xf32>, vector<32x128xf32>, vector<14x128xf32> -> vector<14x128xf32>
    %24 = arith.addf %18, %23 : vector<14x128xf32>
    %c0_24 = arith.constant 0 : index
    %c4 = arith.constant 4 : index
    %c0_25 = arith.constant 0 : index
    %25 = tpu.strided_load %arg1[%c0_24, %c4, %c0_25] {strides = array<i32: 1, 2, 1>} : memref<1x32x32xf32, #tpu.memory_space<vmem>>, vector<1x14x32xf32>
    %26 = vector.shape_cast %25 : vector<1x14x32xf32> to vector<14x32xf32>
    %c4_26 = arith.constant 4 : index
    %c0_27 = arith.constant 0 : index
    %c0_28 = arith.constant 0 : index
    %27 = vector.load %arg2[%c4_26, %c0_27, %c0_28] : memref<6x32x128xf32, #tpu.memory_space<vmem>>, vector<1x32x128xf32>
    %28 = vector.shape_cast %27 : vector<1x32x128xf32> to vector<32x128xf32>
    %cst_29 = arith.constant dense<0.000000e+00> : vector<14x128xf32>
    %29 = tpu.matmul %26, %28, %cst_29 {dimension_numbers = #tpu.dot_dimension_numbers<[1], [0], [0], [1], [0, 0, 1, 1], [], []>} : vector<14x32xf32>, vector<32x128xf32>, vector<14x128xf32> -> vector<14x128xf32>
    %30 = arith.addf %24, %29 : vector<14x128xf32>
    %c0_30 = arith.constant 0 : index
    %c5 = arith.constant 5 : index
    %c0_31 = arith.constant 0 : index
    %31 = tpu.strided_load %arg1[%c0_30, %c5, %c0_31] {strides = array<i32: 1, 2, 1>} : memref<1x32x32xf32, #tpu.memory_space<vmem>>, vector<1x14x32xf32>
    %32 = vector.shape_cast %31 : vector<1x14x32xf32> to vector<14x32xf32>
    %c5_32 = arith.constant 5 : index
    %c0_33 = arith.constant 0 : index
    %c0_34 = arith.constant 0 : index
    %33 = vector.load %arg2[%c5_32, %c0_33, %c0_34] : memref<6x32x128xf32, #tpu.memory_space<vmem>>, vector<1x32x128xf32>
    %34 = vector.shape_cast %33 : vector<1x32x128xf32> to vector<32x128xf32>
    %cst_35 = arith.constant dense<0.000000e+00> : vector<14x128xf32>
    %35 = tpu.matmul %32, %34, %cst_35 {dimension_numbers = #tpu.dot_dimension_numbers<[1], [0], [0], [1], [0, 0, 1, 1], [], []>} : vector<14x32xf32>, vector<32x128xf32>, vector<14x128xf32> -> vector<14x128xf32>
    %36 = arith.addf %30, %35 : vector<14x128xf32>
    %c0_36 = arith.constant 0 : index
    %c0_37 = arith.constant 0 : index
    %37 = vector.load %arg3[%c0_36, %c0_37] : memref<1x128xf32, #tpu.memory_space<vmem>>, vector<1x128xf32>
    %38 = vector.broadcast %37 : vector<1x128xf32> to vector<14x128xf32>
    %39 = arith.addf %36, %38 : vector<14x128xf32>
    %cst_38 = arith.constant 0.000000e+00 : f32
    %40 = vector.broadcast %cst_38 : f32 to vector<10x256xf32>
    %41 = vector.extract_strided_slice %39 {offsets = [0, 0], sizes = [10, 128], strides = [1, 1]} : vector<14x128xf32> to vector<10x128xf32>
    %c0_39 = arith.constant 0 : index
    %c0_40 = arith.constant 0 : index
    %c0_41 = arith.constant 0 : index
    %42 = vector.load %arg4[%c0_39, %c0_40, %c0_41] : memref<5x128x256xf32, #tpu.memory_space<vmem>>, vector<1x128x256xf32>
    %43 = vector.shape_cast %42 : vector<1x128x256xf32> to vector<128x256xf32>
    %cst_42 = arith.constant dense<0.000000e+00> : vector<10x256xf32>
    %44 = tpu.matmul %41, %43, %cst_42 {dimension_numbers = #tpu.dot_dimension_numbers<[1], [0], [0], [1], [0, 0, 1, 1], [], []>} : vector<10x128xf32>, vector<128x256xf32>, vector<10x256xf32> -> vector<10x256xf32>
    %45 = arith.addf %40, %44 : vector<10x256xf32>
    %46 = vector.extract_strided_slice %39 {offsets = [1, 0], sizes = [10, 128], strides = [1, 1]} : vector<14x128xf32> to vector<10x128xf32>
    %c1_43 = arith.constant 1 : index
    %c0_44 = arith.constant 0 : index
    %c0_45 = arith.constant 0 : index
    %47 = vector.load %arg4[%c1_43, %c0_44, %c0_45] : memref<5x128x256xf32, #tpu.memory_space<vmem>>, vector<1x128x256xf32>
    %48 = vector.shape_cast %47 : vector<1x128x256xf32> to vector<128x256xf32>
    %cst_46 = arith.constant dense<0.000000e+00> : vector<10x256xf32>
    %49 = tpu.matmul %46, %48, %cst_46 {dimension_numbers = #tpu.dot_dimension_numbers<[1], [0], [0], [1], [0, 0, 1, 1], [], []>} : vector<10x128xf32>, vector<128x256xf32>, vector<10x256xf32> -> vector<10x256xf32>
    %50 = arith.addf %45, %49 : vector<10x256xf32>
    %51 = vector.extract_strided_slice %39 {offsets = [2, 0], sizes = [10, 128], strides = [1, 1]} : vector<14x128xf32> to vector<10x128xf32>
    %c2_47 = arith.constant 2 : index
    %c0_48 = arith.constant 0 : index
    %c0_49 = arith.constant 0 : index
    %52 = vector.load %arg4[%c2_47, %c0_48, %c0_49] : memref<5x128x256xf32, #tpu.memory_space<vmem>>, vector<1x128x256xf32>
    %53 = vector.shape_cast %52 : vector<1x128x256xf32> to vector<128x256xf32>
    %cst_50 = arith.constant dense<0.000000e+00> : vector<10x256xf32>
    %54 = tpu.matmul %51, %53, %cst_50 {dimension_numbers = #tpu.dot_dimension_numbers<[1], [0], [0], [1], [0, 0, 1, 1], [], []>} : vector<10x128xf32>, vector<128x256xf32>, vector<10x256xf32> -> vector<10x256xf32>
    %55 = arith.addf %50, %54 : vector<10x256xf32>
    %56 = vector.extract_strided_slice %39 {offsets = [3, 0], sizes = [10, 128], strides = [1, 1]} : vector<14x128xf32> to vector<10x128xf32>
    %c3_51 = arith.constant 3 : index
    %c0_52 = arith.constant 0 : index
    %c0_53 = arith.constant 0 : index
    %57 = vector.load %arg4[%c3_51, %c0_52, %c0_53] : memref<5x128x256xf32, #tpu.memory_space<vmem>>, vector<1x128x256xf32>
    %58 = vector.shape_cast %57 : vector<1x128x256xf32> to vector<128x256xf32>
    %cst_54 = arith.constant dense<0.000000e+00> : vector<10x256xf32>
    %59 = tpu.matmul %56, %58, %cst_54 {dimension_numbers = #tpu.dot_dimension_numbers<[1], [0], [0], [1], [0, 0, 1, 1], [], []>} : vector<10x128xf32>, vector<128x256xf32>, vector<10x256xf32> -> vector<10x256xf32>
    %60 = arith.addf %55, %59 : vector<10x256xf32>
    %61 = vector.extract_strided_slice %39 {offsets = [4, 0], sizes = [10, 128], strides = [1, 1]} : vector<14x128xf32> to vector<10x128xf32>
    %c4_55 = arith.constant 4 : index
    %c0_56 = arith.constant 0 : index
    %c0_57 = arith.constant 0 : index
    %62 = vector.load %arg4[%c4_55, %c0_56, %c0_57] : memref<5x128x256xf32, #tpu.memory_space<vmem>>, vector<1x128x256xf32>
    %63 = vector.shape_cast %62 : vector<1x128x256xf32> to vector<128x256xf32>
    %cst_58 = arith.constant dense<0.000000e+00> : vector<10x256xf32>
    %64 = tpu.matmul %61, %63, %cst_58 {dimension_numbers = #tpu.dot_dimension_numbers<[1], [0], [0], [1], [0, 0, 1, 1], [], []>} : vector<10x128xf32>, vector<128x256xf32>, vector<10x256xf32> -> vector<10x256xf32>
    %65 = arith.addf %60, %64 : vector<10x256xf32>
    %c0_59 = arith.constant 0 : index
    %c0_60 = arith.constant 0 : index
    %66 = vector.load %arg5[%c0_59, %c0_60] : memref<1x256xf32, #tpu.memory_space<vmem>>, vector<1x256xf32>
    %67 = vector.broadcast %66 : vector<1x256xf32> to vector<10x256xf32>
    %68 = arith.addf %65, %67 : vector<10x256xf32>
    %c0_61 = arith.constant 0 : index
    %c0_62 = arith.constant 0 : index
    %69 = vector.load %arg7[%c0_61, %c0_62] : memref<1x128xf32, #tpu.memory_space<vmem>>, vector<1x128xf32>
    %70 = vector.extract_strided_slice %68 {offsets = [0, 0], sizes = [1, 256], strides = [1, 1]} : vector<10x256xf32> to vector<1x256xf32>
    %71 = vector.extract_strided_slice %68 {offsets = [1, 0], sizes = [1, 256], strides = [1, 1]} : vector<10x256xf32> to vector<1x256xf32>
    %72 = arith.addf %70, %71 : vector<1x256xf32>
    %c0_63 = arith.constant 0 : index
    %c0_64 = arith.constant 0 : index
    %c0_65 = arith.constant 0 : index
    %73 = vector.load %arg6[%c0_63, %c0_64, %c0_65] : memref<5x256x128xf32, #tpu.memory_space<vmem>>, vector<1x256x128xf32>
    %74 = vector.shape_cast %73 : vector<1x256x128xf32> to vector<256x128xf32>
    %cst_66 = arith.constant dense<0.000000e+00> : vector<1x128xf32>
    %75 = tpu.matmul %72, %74, %cst_66 {dimension_numbers = #tpu.dot_dimension_numbers<[1], [0], [0], [1], [0, 0, 1, 1], [], []>} : vector<1x256xf32>, vector<256x128xf32>, vector<1x128xf32> -> vector<1x128xf32>
    %76 = arith.addf %69, %75 : vector<1x128xf32>
    %77 = vector.extract_strided_slice %68 {offsets = [2, 0], sizes = [1, 256], strides = [1, 1]} : vector<10x256xf32> to vector<1x256xf32>
    %78 = vector.extract_strided_slice %68 {offsets = [3, 0], sizes = [1, 256], strides = [1, 1]} : vector<10x256xf32> to vector<1x256xf32>
    %79 = arith.addf %77, %78 : vector<1x256xf32>
    %c1_67 = arith.constant 1 : index
    %c0_68 = arith.constant 0 : index
    %c0_69 = arith.constant 0 : index
    %80 = vector.load %arg6[%c1_67, %c0_68, %c0_69] : memref<5x256x128xf32, #tpu.memory_space<vmem>>, vector<1x256x128xf32>
    %81 = vector.shape_cast %80 : vector<1x256x128xf32> to vector<256x128xf32>
    %cst_70 = arith.constant dense<0.000000e+00> : vector<1x128xf32>
    %82 = tpu.matmul %79, %81, %cst_70 {dimension_numbers = #tpu.dot_dimension_numbers<[1], [0], [0], [1], [0, 0, 1, 1], [], []>} : vector<1x256xf32>, vector<256x128xf32>, vector<1x128xf32> -> vector<1x128xf32>
    %83 = arith.addf %76, %82 : vector<1x128xf32>
    %84 = vector.extract_strided_slice %68 {offsets = [4, 0], sizes = [1, 256], strides = [1, 1]} : vector<10x256xf32> to vector<1x256xf32>
    %85 = vector.extract_strided_slice %68 {offsets = [5, 0], sizes = [1, 256], strides = [1, 1]} : vector<10x256xf32> to vector<1x256xf32>
    %86 = arith.addf %84, %85 : vector<1x256xf32>
    %c2_71 = arith.constant 2 : index
    %c0_72 = arith.constant 0 : index
    %c0_73 = arith.constant 0 : index
    %87 = vector.load %arg6[%c2_71, %c0_72, %c0_73] : memref<5x256x128xf32, #tpu.memory_space<vmem>>, vector<1x256x128xf32>
    %88 = vector.shape_cast %87 : vector<1x256x128xf32> to vector<256x128xf32>
    %cst_74 = arith.constant dense<0.000000e+00> : vector<1x128xf32>
    %89 = tpu.matmul %86, %88, %cst_74 {dimension_numbers = #tpu.dot_dimension_numbers<[1], [0], [0], [1], [0, 0, 1, 1], [], []>} : vector<1x256xf32>, vector<256x128xf32>, vector<1x128xf32> -> vector<1x128xf32>
    %90 = arith.addf %83, %89 : vector<1x128xf32>
    %91 = vector.extract_strided_slice %68 {offsets = [6, 0], sizes = [1, 256], strides = [1, 1]} : vector<10x256xf32> to vector<1x256xf32>
    %92 = vector.extract_strided_slice %68 {offsets = [7, 0], sizes = [1, 256], strides = [1, 1]} : vector<10x256xf32> to vector<1x256xf32>
    %93 = arith.addf %91, %92 : vector<1x256xf32>
    %c3_75 = arith.constant 3 : index
    %c0_76 = arith.constant 0 : index
    %c0_77 = arith.constant 0 : index
    %94 = vector.load %arg6[%c3_75, %c0_76, %c0_77] : memref<5x256x128xf32, #tpu.memory_space<vmem>>, vector<1x256x128xf32>
    %95 = vector.shape_cast %94 : vector<1x256x128xf32> to vector<256x128xf32>
    %cst_78 = arith.constant dense<0.000000e+00> : vector<1x128xf32>
    %96 = tpu.matmul %93, %95, %cst_78 {dimension_numbers = #tpu.dot_dimension_numbers<[1], [0], [0], [1], [0, 0, 1, 1], [], []>} : vector<1x256xf32>, vector<256x128xf32>, vector<1x128xf32> -> vector<1x128xf32>
    %97 = arith.addf %90, %96 : vector<1x128xf32>
    %98 = vector.extract_strided_slice %68 {offsets = [8, 0], sizes = [1, 256], strides = [1, 1]} : vector<10x256xf32> to vector<1x256xf32>
    %99 = vector.extract_strided_slice %68 {offsets = [9, 0], sizes = [1, 256], strides = [1, 1]} : vector<10x256xf32> to vector<1x256xf32>
    %100 = arith.addf %98, %99 : vector<1x256xf32>
    %c4_79 = arith.constant 4 : index
    %c0_80 = arith.constant 0 : index
    %c0_81 = arith.constant 0 : index
    %101 = vector.load %arg6[%c4_79, %c0_80, %c0_81] : memref<5x256x128xf32, #tpu.memory_space<vmem>>, vector<1x256x128xf32>
    %102 = vector.shape_cast %101 : vector<1x256x128xf32> to vector<256x128xf32>
    %cst_82 = arith.constant dense<0.000000e+00> : vector<1x128xf32>
    %103 = tpu.matmul %100, %102, %cst_82 {dimension_numbers = #tpu.dot_dimension_numbers<[1], [0], [0], [1], [0, 0, 1, 1], [], []>} : vector<1x256xf32>, vector<256x128xf32>, vector<1x128xf32> -> vector<1x128xf32>
    %104 = arith.addf %97, %103 : vector<1x128xf32>
    %c0_83 = arith.constant 0 : index
    %c0_84 = arith.constant 0 : index
    %105 = vector.load %arg8[%c0_83, %c0_84] : memref<128x128xf32, #tpu.memory_space<vmem>>, vector<128x128xf32>
    %cst_85 = arith.constant dense<0.000000e+00> : vector<1x128xf32>
    %106 = tpu.matmul %104, %105, %cst_85 {dimension_numbers = #tpu.dot_dimension_numbers<[1], [0], [0], [1], [0, 0, 1, 1], [], []>} : vector<1x128xf32>, vector<128x128xf32>, vector<1x128xf32> -> vector<1x128xf32>
    %c0_86 = arith.constant 0 : index
    %c0_87 = arith.constant 0 : index
    %107 = vector.load %arg9[%c0_86, %c0_87] : memref<1x128xf32, #tpu.memory_space<vmem>>, vector<1x128xf32>
    %108 = arith.addf %106, %107 : vector<1x128xf32>
    %c0_88 = arith.constant 0 : index
    %c0_89 = arith.constant 0 : index
    %109 = vector.load %arg10[%c0_88, %c0_89] : memref<128x128xf32, #tpu.memory_space<vmem>>, vector<128x128xf32>
    %cst_90 = arith.constant dense<0.000000e+00> : vector<1x128xf32>
    %110 = tpu.matmul %108, %109, %cst_90 {dimension_numbers = #tpu.dot_dimension_numbers<[1], [0], [0], [1], [0, 0, 1, 1], [], []>} : vector<1x128xf32>, vector<128x128xf32>, vector<1x128xf32> -> vector<1x128xf32>
    %c0_91 = arith.constant 0 : index
    %c0_92 = arith.constant 0 : index
    %111 = vector.load %arg11[%c0_91, %c0_92] : memref<1x128xf32, #tpu.memory_space<vmem>>, vector<1x128xf32>
    %112 = arith.addf %110, %111 : vector<1x128xf32>
    %113 = tpu.iota {dimensions = array<i32: 1>} : vector<1x128xi32>
    %c10_i32 = arith.constant 10 : i32
    %114 = vector.broadcast %c10_i32 : i32 to vector<1x128xi32>
    %115 = arith.cmpi slt, %113, %114 : vector<1x128xi32>
    %cst_93 = arith.constant -1.000000e+30 : f32
    %116 = vector.broadcast %cst_93 : f32 to vector<1x128xf32>
    %117 = arith.select %115, %112, %116 : vector<1x128xi1>, vector<1x128xf32>
    %cst_94 = arith.constant dense<0xFF800000> : vector<1xf32>
    %118 = vector.multi_reduction <maximumf>, %117, %cst_94 [1] : vector<1x128xf32> to vector<1xf32>
    %119 = vector.shape_cast %118 : vector<1xf32> to vector<1x1xf32>
    %120 = vector.broadcast %119 : vector<1x1xf32> to vector<1x128xf32>
    %121 = arith.subf %117, %120 : vector<1x128xf32>
    %122 = math.exp %121 : vector<1x128xf32>
    %cst_95 = arith.constant 0.000000e+00 : f32
    %123 = vector.broadcast %cst_95 : f32 to vector<1x128xf32>
    %124 = arith.select %115, %122, %123 : vector<1x128xi1>, vector<1x128xf32>
    %cst_96 = arith.constant dense<0.000000e+00> : vector<1xf32>
    %125 = vector.multi_reduction <add>, %124, %cst_96 [1] : vector<1x128xf32> to vector<1xf32>
    %126 = vector.shape_cast %125 : vector<1xf32> to vector<1x1xf32>
    %127 = vector.broadcast %126 : vector<1x1xf32> to vector<1x128xf32>
    %128 = arith.divf %124, %127 : vector<1x128xf32>
    %c0_97 = arith.constant 0 : index
    %c0_98 = arith.constant 0 : index
    %c0_99 = arith.constant 0 : index
    %129 = vector.load %arg12[%c0_97, %c0_98, %c0_99] : memref<1x1x128xf32, #tpu.memory_space<vmem>>, vector<1x1x128xf32>
    %130 = vector.shape_cast %129 : vector<1x1x128xf32> to vector<1x128xf32>
    %131 = vector.shape_cast %128 : vector<1x128xf32> to vector<1x1x128xf32>
    tpu.vector_store %arg12[%c0_97, %c0_98, %c0_99], %131 {strides = array<i32>} : memref<1x1x128xf32, #tpu.memory_space<vmem>>, vector<1x1x128xf32>,
    return
  }
  func.func @transform_0(%arg0: i32) -> (i32, i32, i32) {
    %c0_i32 = arith.constant 0 : i32
    %c0_i32_0 = arith.constant 0 : i32
    %c0_i32_1 = arith.constant 0 : i32
    return %arg0, %c0_i32, %c0_i32_0 : i32, i32, i32
  }
  func.func @transform_1(%arg0: i32) -> (i32, i32, i32) {
    %c0_i32 = arith.constant 0 : i32
    %c0_i32_0 = arith.constant 0 : i32
    %c0_i32_1 = arith.constant 0 : i32
    %c0_i32_2 = arith.constant 0 : i32
    return %c0_i32, %c0_i32_0, %c0_i32_1 : i32, i32, i32
  }
  func.func @transform_2(%arg0: i32) -> (i32, i32) {
    %c0_i32 = arith.constant 0 : i32
    %c0_i32_0 = arith.constant 0 : i32
    %c0_i32_1 = arith.constant 0 : i32
    return %c0_i32, %c0_i32_0 : i32, i32
  }
  func.func @transform_3(%arg0: i32) -> (i32, i32, i32) {
    %c0_i32 = arith.constant 0 : i32
    %c0_i32_0 = arith.constant 0 : i32
    %c0_i32_1 = arith.constant 0 : i32
    %c0_i32_2 = arith.constant 0 : i32
    return %c0_i32, %c0_i32_0, %c0_i32_1 : i32, i32, i32
  }
  func.func @transform_4(%arg0: i32) -> (i32, i32) {
    %c0_i32 = arith.constant 0 : i32
    %c0_i32_0 = arith.constant 0 : i32
    %c0_i32_1 = arith.constant 0 : i32
    return %c0_i32, %c0_i32_0 : i32, i32
  }
  func.func @transform_5(%arg0: i32) -> (i32, i32, i32) {
    %c0_i32 = arith.constant 0 : i32
    %c0_i32_0 = arith.constant 0 : i32
    %c0_i32_1 = arith.constant 0 : i32
    %c0_i32_2 = arith.constant 0 : i32
    return %c0_i32, %c0_i32_0, %c0_i32_1 : i32, i32, i32
  }
  func.func @transform_6(%arg0: i32) -> (i32, i32) {
    %c0_i32 = arith.constant 0 : i32
    %c0_i32_0 = arith.constant 0 : i32
    %c0_i32_1 = arith.constant 0 : i32
    return %c0_i32, %c0_i32_0 : i32, i32
  }
  func.func @transform_7(%arg0: i32) -> (i32, i32) {
    %c0_i32 = arith.constant 0 : i32
    %c0_i32_0 = arith.constant 0 : i32
    %c0_i32_1 = arith.constant 0 : i32
    return %c0_i32, %c0_i32_0 : i32, i32
  }
  func.func @transform_8(%arg0: i32) -> (i32, i32) {
    %c0_i32 = arith.constant 0 : i32
    %c0_i32_0 = arith.constant 0 : i32
    %c0_i32_1 = arith.constant 0 : i32
    return %c0_i32, %c0_i32_0 : i32, i32
  }
  func.func @transform_9(%arg0: i32) -> (i32, i32) {
    %c0_i32 = arith.constant 0 : i32
    %c0_i32_0 = arith.constant 0 : i32
    %c0_i32_1 = arith.constant 0 : i32
    return %c0_i32, %c0_i32_0 : i32, i32
  }
  func.func @transform_10(%arg0: i32) -> (i32, i32) {
    %c0_i32 = arith.constant 0 : i32
    %c0_i32_0 = arith.constant 0 : i32
    %c0_i32_1 = arith.constant 0 : i32
    return %c0_i32, %c0_i32_0 : i32, i32
  }
  func.func @transform_11(%arg0: i32) -> (i32, i32, i32) {
    %c0_i32 = arith.constant 0 : i32
    %c0_i32_0 = arith.constant 0 : i32
    %c0_i32_1 = arith.constant 0 : i32
    return %arg0, %c0_i32, %c0_i32_0 : i32, i32, i32
  }
}

</mosaic_0001>

<bundles_post_ra>
// kernel: q3model_forward.1
= control target key start
LH: loop header
LB: loop body
LE: loop exit
PB: predicated region body
PF: predicated region fallthrough
CT: control target
= control target key end

     0   :  { %s4057_s0 = inlined_call_operand.vmem [shape: f32[2,32,32], index: 0, kind: input, shape index: {}]   ;;  %s4058_s1 = inlined_call_operand.vmem [shape: f32[6,32,128], index: 1, kind: input, shape index: {}]   ;;  %s4059_s2 = inlined_call_operand.vmem [shape: f32[1,128], index: 2, kind: input, shape index: {}]   ;;  %s4060_s3 = inlined_call_operand.hbm [shape: f32[5,128,256], index: 3, kind: input, shape index: {}]   ;;  %s4061_s4 = inlined_call_operand.vmem [shape: f32[1,256], index: 4, kind: input, shape index: {}]   ;;  %s4062_s5 = inlined_call_operand.hbm [shape: f32[5,256,128], index: 5, kind: input, shape index: {}]   ;;  %s4063_s6 = inlined_call_operand.vmem [shape: f32[1,128], index: 6, kind: input, shape index: {}]   ;;  %s4064_s7 = inlined_call_operand.vmem [shape: f32[128,128], index: 7, kind: input, shape index: {}]   ;;  %s4065_s8 = inlined_call_operand.vmem [shape: f32[1,128], index: 8, kind: input, shape index: {}]   ;;  %s4066_s9 = inlined_call_operand.hbm [shape: f32[128,128], index: 9, kind: input, shape index: {}]   ;;  %s4067_s10 = inlined_call_operand.vmem [shape: f32[1,128], index: 10, kind: input, shape index: {}]   ;;  %s4068_s11 = inlined_call_operand.hbm [shape: f32[2,1,128], index: 11, kind: output, shape index: {}]  }
   0x1   :  { %4080 = sst [smem:[#allocation18_spill]] %s4062_s5 }
   0x2   :  { %16 = vsyncpa [#allocation3], 0 }
   0x3   :  { %17 = vsyncpa [#allocation6], 0 }
   0x4   :  { %18 = vsyncpa [#allocation4], 0 }
   0x5   :  { %20 = vsyncpa [#allocation4 + $0x1], 0  ;;  %s3619_s17 = smov 0   ;;  %s3621_s18 = smov 0  }
   0x6   :  { %s3623_s19 = smov 0   ;;  %s3625_s20 = smov 0  }
   0x7 LB: > { %4081 = sst [smem:[#allocation12_spill]] %s3534_s17  ;;  %s3640_s21 = sadd.s32 4294967295, %s3546_s20   ;;  %s3546_s20 = sphi %s3625_s20, %s4105_s20   ;;  %s3542_s19 = sphi %s3623_s19, %s4107_s19   ;;  %s3538_s18 = sphi %s3621_s18, %s4109_s18   ;;  %s3534_s17 = sphi %s3619_s17, %s4108_s17  }
   0x8   : > { %4082 = sst [smem:[#allocation13_spill]] %s3542_s19  ;;  %s2428_s22 = sadd.s32 4294967294, %s3546_s20  }
   0x9   : > { %4083 = sst [smem:[#allocation14_spill]] %s3546_s20  ;;  %s3644_s23 = sadd.s32 1, %s3546_s20  }
   0xa   : > { %4084 = sst [smem:[#allocation15_spill]] %s3644_s23  ;;  %s269_s24 = sadd.s32 1, %s3542_s19 }
   0xb   : > { %s266_s25 = ssub.s32 %s3546_s20, %s3644_s23  ;;  %p279_p0 = scmp.ne.s32.totalorder %s3542_s19, %s3538_s18 }
   0xc   : > { %p267_p1 = scmp.eq.s32.totalorder %s266_s25, 0  ;;  %p280_p2 = scmp.eq.s32.totalorder %s3640_s21, 1 }
   0xd   : > { %p285_p3 = scmp.ne.s32.totalorder %s3538_s18, %s3534_s17  ;;  %p286_p4 = scmp.eq.s32.totalorder %s2428_s22, 1 }
   0xe   : > { %s3655_s26 = scalar_select %p267_p1, %s3542_s19, %s269_s24  }
   0xf   : > { %p3657_p5 = por %p280_p2, %p279_p0  ;;  %p3661_p6 = por %p286_p4, %p285_p3 }
  0x10   : > { %4085 = sst [smem:[#allocation16_spill]] %s3655_s26  ;;  %p2429_p7 = scmp.ge.s32.totalorder %s3546_s20, 1 }
  0x11   : > { %s4086_s27 = scalar_select %p3657_p5, 1, 0 }
  0x12   : > { %s4087_s28 = scalar_select %p3661_p6, 1, 0 }
  0x13   : > { %p293_p8 = scmp.lt.s32.totalorder %s3546_s20, 3  ;;  %p4070_p9 = scmp.eq.s32.totalorder %s3640_s21, 0 }
  0x14   : > { %4088 = sst [smem:[#allocation17_spill]] %s4087_s28  ;;  %s3548_s30 = smov [#allocation5]  }
  0x15   : > { %p3668_p10 = pnand %p2429_p7, %p293_p8  ;;  %s327_s12 = sshll.u32 %s3548_s30, 4  ;;  %s328_s12 = int_to_ptr.vmem [resolvable:$true] %s327_s12 }
  0x16   : > { %s3549_s14 = smov [#allocation2]   ;;  %s4091_s5 = sld [smem:[#allocation18_spill]] }
  0x17   : > { %s4089_s29 = scalar_select %p3668_p10, 1, 0 }
  0x18   : > { %p3325_p11 = pneg %p3668_p10  ;;  %s311_s15 = sshll.u32 %s3549_s14, 4  ;;  %s3680_s15 = int_to_ptr.vmem [resolvable:$true] %s311_s15 }
  0x1a   : > { %p3676_p12 = pnand %p4070_p9, %p3325_p11 }
  0x1c   : > { %s3392_s24 = scalar_lea.hbm %s4091_s5, 20480  ;;  %p3690_p0 = pneg %p3676_p12 }
  0x1d   : > { %p3393_p13 = scmp.ne.s32.totalorder %s4091_s5, %s3392_s24  ;;  %p3399_p3 = scmp.lt.u32.totalorder %s3392_s24, %s4091_s5 }
  0x1f   : > { %p3395_p1 = pnand %p3690_p0, %p3393_p13 }
  0x21   : > { %p3396_p2 = pneg %p3395_p1 }
  0x23   : > { %p3401_p4 = pnand %p3399_p3, %p3396_p2 }
  0x25   : > { %3404 = shalt.err (!%p3401_p4)
}
  0x26   : > { %s3405_s16 = scalar_lea.vmem %s328_s12, 20480  ;;  %p3413_p9 = scmp.lt.s32.totalorder %s328_s12, %s328_s12 }
  0x27   : > { %p3406_p7 = scmp.ne.s32.totalorder %s328_s12, %s3405_s16  ;;  %p3414_p6 = scmp.lt.s32.totalorder %s3405_s16, %s3405_s16 }
  0x29   : > { %p3408_p8 = pnand %p3406_p7, %p3690_p0  ;;  %p3415_p5 = por %p3414_p6, %p3413_p9 }
  0x2b   : > { %p3409_p11 = pneg %p3408_p8 }
  0x2d   : > { %p3416_p10 = pnand %p3415_p5, %p3409_p11 }
  0x2f   : > { %3419 = shalt.err (!%p3416_p10)
}
  0x30   : > { %s4078_s26 = smov 128   ;;  %s4079_s22 = smov 8  }
  0x31   : > { %3331 = dma.hbm_to_vmem [thread:$0]  (!%p3676_p12), %s4091_s5, 20480, %s328_s12, [#allocation6], %s4078_s26, %s4078_s26, %s4079_s22  }
  0x32   : > { %s3420_s23 = scalar_lea.hbm %s4060_s3, 20480 }
  0x33   : > { %p3421_p5 = scmp.ne.s32.totalorder %s4060_s3, %s3420_s23  ;;  %p3427_p10 = scmp.lt.u32.totalorder %s3420_s23, %s4060_s3 }
  0x35   : > { %p3423_p6 = pnand %p3421_p5, %p3690_p0 }
  0x37   : > { %p3424_p9 = pneg %p3423_p6 }
  0x39   : > { %p3429_p13 = pnand %p3427_p10, %p3424_p9 }
  0x3b   : > { %3432 = shalt.err (!%p3429_p13)
}
  0x3c   : > { %s3433_s12 = scalar_lea.vmem %s3680_s15, 20480  ;;  %p3441_p4 = scmp.lt.s32.totalorder %s3680_s15, %s3680_s15 }
  0x3d   : > { %p3434_p1 = scmp.ne.s32.totalorder %s3680_s15, %s3433_s12  ;;  %p3442_p7 = scmp.lt.s32.totalorder %s3433_s12, %s3433_s12 }
  0x3f   : > { %p3436_p2 = pnand %p3434_p1, %p3690_p0  ;;  %p3443_p8 = por %p3442_p7, %p3441_p4 }
  0x41   : > { %p3437_p3 = pneg %p3436_p2 }
  0x43   : > { %p3444_p11 = pnand %p3443_p8, %p3437_p3 }
  0x45   : > { %3447 = shalt.err (!%p3444_p11)
}
  0x46   : > { %s3552_s28 = smov 256   ;;  %s3553_s17 = smov 16  }
  0x47   : > { %3328 = dma.hbm_to_vmem [thread:$0]  (!%p3676_p12), %s4060_s3, 20480, %s3680_s15, [#allocation3], %s3552_s28, %s3552_s28, %s3553_s17  }
  0x48   : > { %s3554_s19 = smov [#allocation7]   ;;  %s3448_s16 = scalar_lea.hbm %s4066_s9, 2048 }
  0x49   : > { %s349_s24 = sshll.u32 %s3554_s19, 4  ;;  %p3449_p5 = scmp.ne.s32.totalorder %s4066_s9, %s3448_s16  ;;  %s350_s24 = int_to_ptr.vmem [resolvable:$true] %s349_s24 }
  0x4a   : > { %p3455_p10 = scmp.lt.u32.totalorder %s3448_s16, %s4066_s9 }
  0x4b   : > { %p3451_p6 = pnand %p3449_p5, %p3690_p0 }
  0x4d   : > { %p3452_p9 = pneg %p3451_p6 }
  0x4f   : > { %p3457_p13 = pnand %p3455_p10, %p3452_p9 }
  0x51   : > { %3460 = shalt.err (!%p3457_p13)
}
  0x52   : > { %s3461_s15 = scalar_lea.vmem %s350_s24, 2048  ;;  %p3469_p4 = scmp.lt.s32.totalorder %s350_s24, %s350_s24 }
  0x53   : > { %p3462_p1 = scmp.ne.s32.totalorder %s350_s24, %s3461_s15  ;;  %p3470_p7 = scmp.lt.s32.totalorder %s3461_s15, %s3461_s15 }
  0x55   : > { %p3464_p2 = pnand %p3462_p1, %p3690_p0  ;;  %p3471_p8 = por %p3470_p7, %p3469_p4 }
  0x57   : > { %p3465_p3 = pneg %p3464_p2 }
  0x59   : > { %p3472_p11 = pnand %p3471_p8, %p3465_p3 }
  0x5b   : > { %3475 = shalt.err (!%p3472_p11)
}
  0x5c   : > { %s4093_s26 = smov 8   ;;  %s4094_s28 = smov 128  }
  0x5d   : > { %3334 = dma.hbm_to_vmem [thread:$0]  (!%p3676_p12), %s4066_s9, 2048, %s350_s24, [#allocation6], %s4094_s28, %s4094_s28, %s4093_s26  }
  0x5e   : > { %p4095_p5 = scmp.ne.s32.totalorder %s4089_s29, 0 }
  0x5f   : > { %p4096_p0 = scmp.eq.s32.totalorder (!%p4095_p5), %s3640_s21, 0 }
  0x60   : > { %376 = sbr.rel (%p4095_p5) target bundleno = 1797 (0x705), region = 64 }
  0x67   : > { %3521 = dma.done.wait (%p4096_p0), [#allocation3], 20480   ;;  %p4097_p6 = pmov %p4096_p0 }
  0x68   : > { %p4098_p9 = pmov %p4096_p0 }
  0x69   : > { %3523 = vsyncadd (%p4097_p6), [#allocation3], 4294946816 }
  0x6a   : > { %3525 = dma.done.wait (%p4098_p9), [#allocation6], 22528   ;;  %p4099_p10 = pmov %p4096_p0 }
  0x6b   : > { %p423_p13 = scmp.lt.s32.totalorder %s3640_s21, 1  ;;  %vm444_vm0 = vcmask 261120   ;;  %v2443_v0 = vld [vmem:[%s4058_s1 + $0x20] sm:$0xff]  ;;  %v2444_v1 = vld [vmem:[%s4058_s1 + $0x28] sm:$0xff]  ;;  %v2445_v2 = vld [vmem:[%s4058_s1 + $0x30] sm:$0xff]  ;;  %vm1051_vm1 = vcmask 1046528  }
  0x6c   : > { %3527 = vsyncadd (%p4099_p10), [#allocation6], 4294944768  ;;  %v2869_v3 = vpack.c.bf16 %v2444_v1, %v2443_v0  ;;  %v2446_v4 = vld [vmem:[%s4058_s1 + $0x38] sm:$0xff]  ;;  %v431_v7 = vld [vmem:[%s4058_s1] sm:$0xff]  ;;  %vm1244_vm2 = vcmask 1045504   ;;  %vm1364_vm3 = vcmask 1044480  }
  0x6d   : > { %s424_s13 = scalar_select %p423_p13, %s3640_s21, 1  ;;  %v2873_v6 = vpack.c.bf16 %v2446_v4, %v2445_v2  ;;  %v432_v8 = vld [vmem:[%s4058_s1 + $0x8] sm:$0xff]  ;;  %v433_v10 = vld [vmem:[%s4058_s1 + $0x10] sm:$0xff]  ;;  %v434_v11 = vld [vmem:[%s4058_s1 + $0x18] sm:$0xff]  ;;  %vm1484_vm4 = vcmask 1043456   ;;  %vm3557_vm5 = vmmov 0  }
  0x6e   : > { %2870 = vmatprep.subr.bf16.mxu0 %v2869_v3  ;;  %v2877_v9 = vpack.c.bf16 %v432_v8, %v431_v7  ;;  %v2881_v13 = vpack.c.bf16 %v434_v11, %v433_v10  ;;  %v2453_v15 = vld [vmem:[%s4058_s1 + $0x40] sm:$0xff]  ;;  %v2454_v16 = vld [vmem:[%s4058_s1 + $0x48] sm:$0xff]  ;;  %v2455_v17 = vld [vmem:[%s4058_s1 + $0x50] sm:$0xff]  ;;  %vm2315_vm7 = vcmask 1040384   ;;  %s421_s15 = sand.u32 1, %s3538_s18   ;;  %s2484_s26 = sshll.u32 %s3640_s21, 4 }
  0x6f   : > { %s2487_s30 = sshll.u32 %s424_s13, 5  ;;  %2872 = vmatpush3.bf16.msra.mxu0 %v2869_v3  ;;  %v1018_v18 = vld [vmem:[#allocation2 + $0x108] sm:$0xff]  ;;  %v1020_v19 = vld [vmem:[#allocation2 + $0x118] sm:$0xff]  ;;  %v1017_v20 = vld [vmem:[#allocation2 + $0x100] sm:$0xff]  ;;  %v2885_v21 = vpack.c.bf16 %v2454_v16, %v2453_v15  ;;  %s422_s28 = scalar_lea.vmem [#allocation8], %s421_s15 }
  0x70   : > { %s3768_s20 = scalar_lea.vmem %s4057_s0, %s2487_s30  ;;  %2874 = vmatprep.subr.bf16.mxu0 %v2873_v6  ;;  %v2917_v22 = vpack.c.bf16 %v1020_v19, %v1018_v18  ;;  %v1019_v23 = vld [vmem:[#allocation2 + $0x110] sm:$0xff]  ;;  %v1022_v24 = vld [vmem:[#allocation2 + $0x128] sm:$0xff]  ;;  %v1024_v25 = vld [vmem:[#allocation2 + $0x138] sm:$0xff]  ;;  %s2342_s5 = sshll.u32 %s422_s28, 4  ;;  %s4017_s5 = int_to_ptr.vmem [resolvable:$true] %s2342_s5 }
  0x71   : > { %v2441_v5 = vld [vmem:[%s3768_s20 + $0x1] ss:$2 sm:$0xff]  ;;  %v2442_v12 = vld [vmem:[%s3768_s20 + $0x11] ss:$2 sm:$0x3f]  ;;  %v2919_v27 = vpack.c.bf16 %v1019_v23, %v1017_v20  ;;  %v2921_v28 = vpack.c.bf16 %v1024_v25, %v1022_v24  ;;  %s4015_s30 = scalar_lea.hbm %s4068_s11, %s2484_s26  ;;  %s2330_s17 = scalar_lea.sflag [#allocation4], %s421_s15 }
  0x72   : > { %2741 = vmatprep.mubr.msk.f32.mxu0 %vm444_vm0, %v2441_v5  ;;  %v428_v14 = vld [vmem:[%s3768_s20] ss:$2 sm:$0xff]  ;;  %v2456_v26 = vld [vmem:[%s4058_s1 + $0x58] sm:$0xff]  ;;  %v1023_v30 = vld [vmem:[#allocation2 + $0x130] sm:$0xff]  ;;  %2918 = vmatprep.subr.bf16.mxu1 %v2917_v22  ;;  %s3476_s29 = scalar_lea.vmem %s4017_s5, 16  ;;  %p4100_p1 = scmp.ne.s32.totalorder %s4086_s27, 0 }
  0x73   : > { %2876 = vmatpush3.bf16.msra.mxu0 %v2873_v6  ;;  %v1021_v29 = vld [vmem:[#allocation2 + $0x120] sm:$0xff]  ;;  %v1026_v31 = vld [vmem:[#allocation2 + $0x148] sm:$0xff]  ;;  %v1028_v32 = vld [vmem:[#allocation2 + $0x158] sm:$0xff]  ;;  %2920 = vmatpush1.bf16.msra.mxu1 %v2919_v27  ;;  %v2889_v34 = vpack.c.bf16 %v2456_v26, %v2455_v17  ;;  %p3477_p12 = scmp.ne.s32.totalorder %s4017_s5, %s3476_s29  ;;  %s3558_s21 = smov [#allocation8]  }
  0x74   : > { %2878 = vmatprep.subr.bf16.mxu0 %v2877_v9  ;;  %v2440_v33 = vld [vmem:[%s3768_s20 + $0x10] ss:$2 sm:$0x3f]  ;;  %v2461_v36 = vld [vmem:[%s4058_s1 + $0x60] sm:$0xff]  ;;  %2922 = vmatprep.subr.bf16.mxu1 %v2921_v28  ;;  %v2923_v37 = vpack.c.bf16 %v1023_v30, %v1021_v29  ;;  %v2462_v38 = vld [vmem:[%s4058_s1 + $0x68] sm:$0xff]  ;;  %v2925_v39 = vpack.c.bf16 %v1028_v32, %v1026_v31  ;;  %s3480_s23 = sshll.u32 %s3558_s21, 4  ;;  %s3481_s23 = int_to_ptr.vmem [resolvable:$false] %s3480_s23 }
  0x75   : > { %v2451_v35 = vld [vmem:[%s3768_s20 + $0x2] ss:$2 sm:$0xff]  ;;  %v1032_v43 = vld [vmem:[#allocation2 + $0x178] sm:$0xff]  ;;  %v2893_v44 = vpack.c.bf16 %v2462_v38, %v2461_v36  ;;  %v2459_v55 = vld [vmem:[%s3768_s20 + $0x3] ss:$2 sm:$0xff]  ;;  %p3478_p2 = pnand %p3477_p12, %p4100_p1  ;;  %s3482_s19 = scalar_lea.vmem %s3481_s23, 32 }
  0x76   : > { %2742 = vmatmul.mubr.msk.f32.vlgmr.msra.gmra.mrb[0].mxu0 %vm444_vm0, %v2442_v12  ;;  %v1025_v40 = vld [vmem:[#allocation2 + $0x140] sm:$0xff]  ;;  %v1027_v41 = vld [vmem:[#allocation2 + $0x150] sm:$0xff]  ;;  %v1030_v42 = vld [vmem:[#allocation2 + $0x168] sm:$0xff]  ;;  %p3483_p4 = scmp.lt.s32.totalorder %s4017_s5, %s3481_s23  ;;  %p3484_p7 = scmp.lt.s32.totalorder %s3482_s19, %s3476_s29 }
  0x77   : > { %2880 = vmatpush3.bf16.msra.mxu0 %v2877_v9  ;;  %2752 = vmatprep.mubr.msk.f32.mxu0 %vm444_vm0, %v428_v14  ;;  %v2463_v45 = vld [vmem:[%s4058_s1 + $0x70] sm:$0xff]  ;;  %v2927_v46 = vpack.c.bf16 %v1027_v41, %v1025_v40  ;;  %v2464_v47 = vld [vmem:[%s4058_s1 + $0x78] sm:$0xff]  ;;  %v2929_v48 = vpack.c.bf16 %v1032_v43, %v1030_v42  ;;  %v1029_v49 = vld [vmem:[#allocation2 + $0x160] sm:$0xff]  ;;  %p3479_p3 = pneg %p3478_p2 }
  0x78   : > { %2882 = vmatprep.subr.bf16.mxu0 %v2881_v13  ;;  %2924 = vmatpush1.bf16.msra.mxu1 %v2923_v37  ;;  %v1031_v50 = vld [vmem:[#allocation2 + $0x170] sm:$0xff]  ;;  %v1034_v51 = vld [vmem:[#allocation2 + $0x188] sm:$0xff]  ;;  %v1036_v52 = vld [vmem:[#allocation2 + $0x198] sm:$0xff]  ;;  %v2897_v54 = vpack.c.bf16 %v2464_v47, %v2463_v45  ;;  %p3485_p8 = por %p3484_p7, %p3483_p4 }
  0x79   : > { %2926 = vmatprep.subr.bf16.mxu1 %v2925_v39  ;;  %v2452_v53 = vld [vmem:[%s3768_s20 + $0x12] ss:$2 sm:$0x3f]  ;;  %v2469_v56 = vld [vmem:[%s4058_s1 + $0x80] sm:$0xff]  ;;  %v2931_v57 = vpack.c.bf16 %v1031_v50, %v1029_v49  ;;  %v2470_v58 = vld [vmem:[%s4058_s1 + $0x88] sm:$0xff]  ;;  %v2933_v59 = vpack.c.bf16 %v1036_v52, %v1034_v51 }
  0x7a   : > { %v1033_v60 = vld [vmem:[#allocation2 + $0x180] sm:$0xff]  ;;  %v1035_v61 = vld [vmem:[#allocation2 + $0x190] sm:$0xff]  ;;  %v1038_v62 = vld [vmem:[#allocation2 + $0x1a8] sm:$0xff]  ;;  %v2901_v0 = vpack.c.bf16 %v2470_v58, %v2469_v56  ;;  %p3486_p11 = pnand %p3485_p8, %p3479_p3 }
  0x7b   : > { %2884 = vmatpush3.bf16.msra.mxu0 %v2881_v13  ;;  %v1040_v63 = vld [vmem:[#allocation2 + $0x1b8] sm:$0xff]  ;;  %v2471_v1 = vld [vmem:[%s4058_s1 + $0x90] sm:$0xff]  ;;  %v2935_v2 = vpack.c.bf16 %v1035_v61, %v1033_v60  ;;  %v1037_v5 = vld [vmem:[#allocation2 + $0x1a0] sm:$0xff] }
  0x7c   : > { %2886 = vmatprep.subr.bf16.mxu0 %v2885_v21  ;;  %2928 = vmatpush1.bf16.msra.mxu1 %v2927_v46  ;;  %v2472_v3 = vld [vmem:[%s4058_s1 + $0x98] sm:$0xff]  ;;  %v2937_v4 = vpack.c.bf16 %v1040_v63, %v1038_v62  ;;  %v1039_v6 = vld [vmem:[#allocation2 + $0x1b0] sm:$0xff]  ;;  %v1042_v7 = vld [vmem:[#allocation2 + $0x1c8] sm:$0xff] }
  0x7d   : > { %2930 = vmatprep.subr.bf16.mxu1 %v2929_v48  ;;  %v1044_v8 = vld [vmem:[#allocation2 + $0x1d8] sm:$0xff]  ;;  %v2905_v10 = vpack.c.bf16 %v2472_v3, %v2471_v1  ;;  %v2467_v11 = vld [vmem:[%s3768_s20 + $0x4] ss:$2 sm:$0xff]  ;;  %v2939_v13 = vpack.c.bf16 %v1039_v6, %v1037_v5  ;;  %v2475_v24 = vld [vmem:[%s3768_s20 + $0x5] ss:$2 sm:$0xff] }
  0x7e   : > { %2753 = vmatmul.mubr.msk.f32.vlgmr.msra.gmra.mrb[0].mxu0 %vm444_vm0, %v2440_v33  ;;  %v2460_v9 = vld [vmem:[%s3768_s20 + $0x13] ss:$2 sm:$0x3f]  ;;  %v2477_v12 = vld [vmem:[%s4058_s1 + $0xa0] sm:$0xff]  ;;  %v2478_v14 = vld [vmem:[%s4058_s1 + $0xa8] sm:$0xff]  ;;  %v2941_v15 = vpack.c.bf16 %v1044_v8, %v1042_v7 }
  0x7f   : > { %2888 = vmatpush3.bf16.msra.mxu0 %v2885_v21  ;;  %2763 = vmatprep.mubr.msk.f32.mxu0 %vm444_vm0, %v2451_v35  ;;  %v1041_v16 = vld [vmem:[#allocation2 + $0x1c0] sm:$0xff]  ;;  %v1043_v17 = vld [vmem:[#allocation2 + $0x1d0] sm:$0xff]  ;;  %v2909_v18 = vpack.c.bf16 %v2478_v14, %v2477_v12  ;;  %v2480_v21 = vld [vmem:[%s4058_s1 + $0xb8] sm:$0xff] }
  0x80   : > { %2890 = vmatprep.subr.bf16.mxu0 %v2889_v34  ;;  %2932 = vmatpush1.bf16.msra.mxu1 %v2931_v57  ;;  %v2943_v19 = vpack.c.bf16 %v1043_v17, %v1041_v16  ;;  %v2479_v20 = vld [vmem:[%s4058_s1 + $0xb0] sm:$0xff]  ;;  %v1046_v26 = vld [vmem:[#allocation2 + $0x1e8] sm:$0xff]  ;;  %v1048_v27 = vld [vmem:[#allocation2 + $0x1f8] sm:$0xff] }
  0x81   : > { %2934 = vmatprep.subr.bf16.mxu1 %v2933_v59  ;;  %v2468_v22 = vld [vmem:[%s3768_s20 + $0x14] ss:$2 sm:$0x3f]  ;;  %v2913_v23 = vpack.c.bf16 %v2480_v21, %v2479_v20  ;;  %v2476_v25 = vld [vmem:[%s3768_s20 + $0x15] ss:$2 sm:$0x3f]  ;;  %v2945_v28 = vpack.c.bf16 %v1048_v27, %v1046_v26 }
  0x82   : > { %v1045_v29 = vld [vmem:[#allocation2 + $0x1e0] sm:$0xff]  ;;  %v1047_v30 = vld [vmem:[#allocation2 + $0x1f0] sm:$0xff]  ;;  %v985_v32 = vld [vmem:[#allocation2 + $0x8] sm:$0xff] }
  0x83   : > { %2892 = vmatpush3.bf16.msra.mxu0 %v2889_v34  ;;  %v2947_v31 = vpack.c.bf16 %v1047_v30, %v1045_v29  ;;  %v987_v33 = vld [vmem:[#allocation2 + $0x18] sm:$0xff]  ;;  %v3555_v34 = vmov 0.0   ;;  %v2483_v36 = vld [vmem:[%s4059_s2] ss:$0 sm:$0xff]  ;;  %v986_v38 = vld [vmem:[#allocation2 + $0x10] sm:$0xff] }
  0x84   : > { %2894 = vmatprep.subr.bf16.mxu0 %v2893_v44  ;;  %2936 = vmatpush1.bf16.msra.mxu1 %v2935_v2  ;;  %v2949_v35 = vpack.c.bf16 %v987_v33, %v985_v32  ;;  %v984_v37 = vld [vmem:[#allocation2] sm:$0xff]  ;;  %v991_v45 = vld [vmem:[#allocation2 + $0x38] sm:$0xff]  ;;  %v990_v56 = vld [vmem:[#allocation2 + $0x30] sm:$0xff] }
  0x85   : > { %2938 = vmatprep.subr.bf16.mxu1 %v2937_v4  ;;  %1121 = vmatprep.mubr.f32.mxu1 %v3555_v34  ;;  %v2951_v42 = vpack.c.bf16 %v986_v38, %v984_v37  ;;  %v993_v58 = vld [vmem:[#allocation2 + $0x48] sm:$0xff]  ;;  %v995_v59 = vld [vmem:[#allocation2 + $0x58] sm:$0xff]  ;;  %v992_v1 = vld [vmem:[#allocation2 + $0x40] sm:$0xff] }
  0x86   : > { %2764 = vmatmul.mubr.msk.f32.vlgmr.msra.gmra.mrb[0].mxu0 %vm444_vm0, %v2452_v53  ;;  %v994_v2 = vld [vmem:[#allocation2 + $0x50] sm:$0xff]  ;;  %v997_v3 = vld [vmem:[#allocation2 + $0x68] sm:$0xff]  ;;  %v999_v4 = vld [vmem:[#allocation2 + $0x78] sm:$0xff] }
  0x87   : > { %2896 = vmatpush3.bf16.msra.mxu0 %v2893_v44  ;;  %2774 = vmatprep.mubr.msk.f32.mxu0 %vm444_vm0, %v2459_v55  ;;  %v989_v44 = vld [vmem:[#allocation2 + $0x28] sm:$0xff]  ;;  %v988_v55 = vld [vmem:[#allocation2 + $0x20] sm:$0xff]  ;;  %v1614_v12 = vld [vmem:[#allocation5 + $0x90] sm:$0xff]  ;;  %v2961_v14 = vpack.c.bf16 %v999_v4, %v997_v3 }
  0x88   : > { %2898 = vmatprep.subr.bf16.mxu0 %v2897_v54  ;;  %2940 = vmatpush1.bf16.msra.mxu1 %v2939_v13  ;;  %v2955_v63 = vpack.c.bf16 %v990_v56, %v988_v55  ;;  %v996_v5 = vld [vmem:[#allocation2 + $0x60] sm:$0xff]  ;;  %v1613_v7 = vld [vmem:[#allocation5 + $0x88] sm:$0xff]  ;;  %v1615_v13 = vld [vmem:[#allocation5 + $0x98] sm:$0xff] }
  0x89   : > { %2942 = vmatprep.subr.bf16.mxu1 %v2941_v15  ;;  %v1612_v6 = vld [vmem:[#allocation5 + $0x80] sm:$0xff]  ;;  %v998_v15 = vld [vmem:[#allocation2 + $0x70] sm:$0xff]  ;;  %v3081_v17 = vpack.c.bf16 %v1615_v13, %v1614_v12  ;;  %v1001_v20 = vld [vmem:[#allocation2 + $0x88] sm:$0xff] }
  0x8a   : > { %v1596_v8 = vld [vmem:[#allocation5] sm:$0xff]  ;;  %v1003_v21 = vld [vmem:[#allocation2 + $0x98] sm:$0xff]  ;;  %v1618_v32 = vld [vmem:[#allocation5 + $0xb0] sm:$0xff] }
  0x8b   : > { %2900 = vmatpush3.bf16.msra.mxu0 %v2897_v54  ;;  %v2953_v54 = vpack.c.bf16 %v991_v45, %v989_v44  ;;  %v1600_v27 = vld [vmem:[#allocation5 + $0x20] sm:$0xff]  ;;  %v2965_v29 = vpack.c.bf16 %v1003_v21, %v1001_v20  ;;  %v1005_v33 = vld [vmem:[#allocation2 + $0xa8] sm:$0xff]  ;;  %v1603_v44 = vld [vmem:[#allocation5 + $0x38] sm:$0xff] }
  0x8c   : > { %2902 = vmatprep.subr.bf16.mxu0 %v2901_v0  ;;  %2944 = vmatpush1.bf16.msra.mxu1 %v2943_v19  ;;  %v1599_v19 = vld [vmem:[#allocation5 + $0x18] sm:$0xff]  ;;  %v1000_v30 = vld [vmem:[#allocation2 + $0x80] sm:$0xff]  ;;  %v1013_v3 = vld [vmem:[#allocation2 + $0xe8] sm:$0xff] }
  0x8d   : > { %2946 = vmatprep.subr.bf16.mxu1 %v2945_v28  ;;  %v1601_v28 = vld [vmem:[#allocation5 + $0x28] sm:$0xff]  ;;  %v1008_v56 = vld [vmem:[#allocation2 + $0xc0] sm:$0xff]  ;;  %v1015_v4 = vld [vmem:[#allocation2 + $0xf8] sm:$0xff] }
  0x8e   : > { %2775 = vmatmul.mubr.msk.f32.vlgmr.msra.gmra.mrb[0].mxu0 %vm444_vm0, %v2460_v9  ;;  %v2959_v9 = vpack.c.bf16 %v994_v2, %v992_v1  ;;  %v3087_v37 = vpack.c.bf16 %v1601_v28, %v1600_v27  ;;  %v1622_v1 = vld [vmem:[#allocation5 + $0xd0] sm:$0xff]  ;;  %v1623_v2 = vld [vmem:[#allocation5 + $0xd8] sm:$0xff]  ;;  %v1213_v13 = vld [vmem:[#allocation2 + $0x208] sm:$0xff] }
  0x8f   : > { %2904 = vmatpush3.bf16.msra.mxu0 %v2901_v0  ;;  %2785 = vmatprep.mubr.msk.f32.mxu0 %vm444_vm0, %v2467_v11  ;;  %v2957_v0 = vpack.c.bf16 %v995_v59, %v993_v58  ;;  %v1597_v11 = vld [vmem:[#allocation5 + $0x8] sm:$0xff]  ;;  %v1604_v58 = vld [vmem:[#allocation5 + $0x40] sm:$0xff]  ;;  %v1014_v12 = vld [vmem:[#allocation2 + $0xf0] sm:$0xff] }
  0x90   : > { %2906 = vmatprep.subr.bf16.mxu0 %v2905_v10  ;;  %2948 = vmatpush1.bf16.msra.mxu1 %v2947_v31  ;;  %v3079_v16 = vpack.c.bf16 %v1597_v11, %v1596_v8  ;;  %v1002_v31 = vld [vmem:[#allocation2 + $0x90] sm:$0xff]  ;;  %v1605_v59 = vld [vmem:[#allocation5 + $0x48] sm:$0xff]  ;;  %v1012_v11 = vld [vmem:[#allocation2 + $0xe0] sm:$0xff] }
  0x91   : > { %2950 = vmatprep.subr.bf16.mxu1 %v2949_v35  ;;  %v1007_v35 = vld [vmem:[#allocation2 + $0xb8] sm:$0xff]  ;;  %v2967_v38 = vpack.c.bf16 %v1002_v31, %v1000_v30  ;;  %v1606_v8 = vld [vmem:[#allocation5 + $0x50] sm:$0xff]  ;;  %v1217_v20 = vld [vmem:[#allocation2 + $0x228] sm:$0xff] }
  0x92   : > { %v2969_v45 = vpack.c.bf16 %v1007_v35, %v1005_v33  ;;  %v1219_v21 = vld [vmem:[#allocation2 + $0x238] sm:$0xff]  ;;  %v1220_v30 = vld [vmem:[#allocation2 + $0x240] sm:$0xff]  ;;  %v1222_v31 = vld [vmem:[#allocation2 + $0x250] sm:$0xff] }
  0x93   : > { %2908 = vmatpush3.bf16.msra.mxu0 %v2905_v10  ;;  %v3077_v10 = vpack.c.bf16 %v1613_v7, %v1612_v6  ;;  %v3097_v7 = vpack.c.bf16 %v1623_v2, %v1622_v1  ;;  %v1223_v27 = vld [vmem:[#allocation2 + $0x258] sm:$0xff]  ;;  %v2991_v35 = vpack.c.bf16 %v1222_v31, %v1220_v30 }
  0x94   : > { %2910 = vmatprep.subr.bf16.mxu0 %v2909_v18  ;;  %v1227_v33 = vld [vmem:[#allocation2 + $0x278] sm:$0xff] }
  0x95   : > { %v1243_v1 = vld [vmem:[#allocation2 + $0x2f8] sm:$0xff] }
  0x96   : > { %2786 = vmatmul.mubr.msk.f32.vlgmr.msra.gmra.mrb[0].mxu0 %vm444_vm0, %v2468_v22  ;;  %v1351_v30 = vld [vmem:[#allocation2 + $0x398] sm:$0xff] }
  0x97   : > { %2912 = vmatpush3.bf16.msra.mxu0 %v2909_v18  ;;  %2796 = vmatprep.mubr.msk.f32.mxu0 %vm444_vm0, %v2475_v24  ;;  %v1598_v18 = vld [vmem:[#allocation5 + $0x10] sm:$0xff]  ;;  %v1617_v24 = vld [vmem:[#allocation5 + $0xa8] sm:$0xff] }
  0x98   : > { %2914 = vmatprep.subr.bf16.mxu0 %v2913_v23  ;;  %v3083_v22 = vpack.c.bf16 %v1599_v19, %v1598_v18  ;;  %v1212_v18 = vld [vmem:[#allocation2 + $0x200] sm:$0xff]  ;;  %v1214_v19 = vld [vmem:[#allocation2 + $0x210] sm:$0xff] }
  0x9b   : > { %2916 = vmatpush3.bf16.msra.mxu0 %v2913_v23  ;;  %v1616_v23 = vld [vmem:[#allocation5 + $0xa0] sm:$0xff] }
  0x9c   : > { %3078 = vmatprep.subr.bf16.mxu0 %v3077_v10  ;;  %v3085_v26 = vpack.c.bf16 %v1617_v24, %v1616_v23  ;;  %v2977_v10 = vpack.c.bf16 %v1015_v4, %v1013_v3  ;;  %v2985_v23 = vpack.c.bf16 %v1219_v21, %v1217_v20  ;;  %v1216_v24 = vld [vmem:[#allocation2 + $0x220] sm:$0xff] }
  0x9d   : > { %v1240_v4 = vld [vmem:[#allocation2 + $0x2e0] sm:$0xff] }
  0x9e   : > { %2797 = vmatmul.mubr.msk.f32.vlgmr.msra.gmra.mrb[0].mxu0 %vm444_vm0, %v2476_v25  ;;  %v2963_v25 = vpack.c.bf16 %v998_v15, %v996_v5  ;;  %v3095_v5 = vpack.c.bf16 %v1605_v59, %v1604_v58  ;;  %v1236_v59 = vld [vmem:[#allocation2 + $0x2c0] sm:$0xff] }
  0x9f   : > { %3080 = vmatpush3.bf16.msra.mxu0 %v3079_v16  ;;  %v2979_v16 = vpack.c.bf16 %v1014_v12, %v1012_v11  ;;  %v1334_v11 = vld [vmem:[#allocation2 + $0x310] sm:$0xff]  ;;  %v1337_v12 = vld [vmem:[#allocation2 + $0x328] sm:$0xff] }
  0xa0   : > { %3082 = vmatprep.subr.bf16.mxu0 %v3081_v17 }
  0xa3   : > { %3084 = vmatpush3.bf16.msra.mxu0 %v3083_v22  ;;  %v2983_v22 = vpack.c.bf16 %v1214_v19, %v1212_v18  ;;  %v1341_v18 = vld [vmem:[#allocation2 + $0x348] sm:$0xff]  ;;  %v1343_v19 = vld [vmem:[#allocation2 + $0x358] sm:$0xff] }
  0xa4   : > { %3086 = vmatprep.subr.bf16.mxu0 %v3085_v26  ;;  %v1221_v26 = vld [vmem:[#allocation2 + $0x248] sm:$0xff]  ;;  %v3021_v21 = vpack.c.bf16 %v1343_v19, %v1341_v18  ;;  %v1466_v18 = vld [vmem:[#allocation2 + $0x470] sm:$0xff] }
  0xa5   : > { %v1469_v19 = vld [vmem:[#allocation2 + $0x488] sm:$0xff] }
  0xa7   : > { %3088 = vmatpush3.bf16.msra.mxu0 %v3087_v37  ;;  %v1224_v37 = vld [vmem:[#allocation2 + $0x260] sm:$0xff] }
 0x171   : > { %v2798_v39 = vpop.f32.mrb[0].mxu0 }
 0x172   : > { %v3870_v40 = vadd.f32 %v2798_v39, %v2483_v36  ;;  %v964_v41 = vpop.f32.mrb[1].mxu0  ;;  %v1004_v39 = vld [vmem:[#allocation2 + $0xa0] sm:$0xff] }
 0x173   : > { %v3872_v43 = vadd.f32 %v2483_v36, %v964_v41  ;;  %v1619_v36 = vld [vmem:[#allocation5 + $0xb8] sm:$0xff] }
 0x174   : > { %v1053_v46 = vrot.slane %v3870_v40, 1  ;;  %v1246_v47 = vrot.slane %v3870_v40, 2  ;;  %v1366_v48 = vrot.slane %v3870_v40, 3  ;;  %v1486_v49 = vrot.slane %v3870_v40, 4 }
 0x175   : > { %v1052_v50 = vrot.slane %v3872_v43, 1  ;;  %v1245_v51 = vrot.slane %v3872_v43, 2  ;;  %v1365_v52 = vrot.slane %v3872_v43, 3  ;;  %v1485_v53 = vrot.slane %v3872_v43, 4 }
 0x176   : > { %v3089_v41 = vpack.c.bf16 %v1619_v36, %v1618_v32  ;;  %v1225_v32 = vld [vmem:[#allocation2 + $0x268] sm:$0xff] }
 0x177   : > { %v1054_v57 = vsel %vm1051_vm1, %v1052_v50, %v1053_v46  ;;  %v3886_v60 = vsel %vm1244_vm2, %v1245_v51, %v1246_v47  ;;  %v3891_v61 = vsel %vm1364_vm3, %v1365_v52, %v1366_v48  ;;  %v3896_v62 = vsel %vm1484_vm4, %v1485_v53, %v1486_v49  ;;  %v1620_v50 = vld [vmem:[#allocation5 + $0xc0] sm:$0xff]  ;;  %v1621_v51 = vld [vmem:[#allocation5 + $0xc8] sm:$0xff]  ;;  %v1011_v53 = vld [vmem:[#allocation2 + $0xd8] sm:$0xff] }
 0x178   : > { %1122 = vmatmul.mubr.f32.vlgmr.msra.gmra.mrb[0].mxu1 %v1054_v57  ;;  %v1009_v52 = vld [vmem:[#allocation2 + $0xc8] sm:$0xff]  ;;  %3090 = vmatprep.subr.bf16.mxu0 %v3089_v41  ;;  %v3093_v57 = vpack.c.bf16 %v1621_v51, %v1620_v50  ;;  %v2993_v36 = vpack.c.bf16 %v1227_v33, %v1225_v32  ;;  %v1235_v50 = vld [vmem:[#allocation2 + $0x2b8] sm:$0xff]  ;;  %v1348_v33 = vld [vmem:[#allocation2 + $0x380] sm:$0xff] }
 0x179   : > { %2952 = vmatpush1.bf16.msra.mxu1 %v2951_v42  ;;  %1127 = vmatprep.mubr.f32.mxu1 %v3555_v34  ;;  %v1602_v42 = vld [vmem:[#allocation5 + $0x30] sm:$0xff] }
 0x17a   : > { %2954 = vmatprep.subr.bf16.mxu1 %v2953_v54  ;;  %v3091_v54 = vpack.c.bf16 %v1603_v44, %v1602_v42  ;;  %v1228_v44 = vld [vmem:[#allocation2 + $0x280] sm:$0xff] }
 0x17c   : > { %1128 = vmatmul.mubr.f32.gmra.mrb[2].mxu1 %v1053_v46  ;;  %v1006_v46 = vld [vmem:[#allocation2 + $0xb0] sm:$0xff]  ;;  %3092 = vmatpush3.bf16.msra.mxu0 %v3091_v54 }
 0x17d   : > { %2956 = vmatpush1.bf16.msra.mxu1 %v2955_v63  ;;  %1198 = vmatprep.mubr.f32.mxu1 %v3555_v34  ;;  %v2971_v55 = vpack.c.bf16 %v1006_v46, %v1004_v39  ;;  %v2973_v63 = vpack.c.bf16 %v1011_v53, %v1009_v52  ;;  %v1231_v39 = vld [vmem:[#allocation2 + $0x298] sm:$0xff]  ;;  %v1233_v46 = vld [vmem:[#allocation2 + $0x2a8] sm:$0xff]  ;;  %v1232_v53 = vld [vmem:[#allocation2 + $0x2a0] sm:$0xff] }
 0x17e   : > { %2958 = vmatprep.subr.bf16.mxu1 %v2957_v0  ;;  %v1010_v0 = vld [vmem:[#allocation2 + $0xd0] sm:$0xff]  ;;  %3094 = vmatprep.subr.bf16.mxu0 %v3093_v57  ;;  %v3001_v52 = vpack.c.bf16 %v1235_v50, %v1233_v46  ;;  %v1356_v46 = vld [vmem:[#allocation2 + $0x3c0] sm:$0xff] }
 0x17f   : > { %v2975_v6 = vpack.c.bf16 %v1010_v0, %v1008_v56  ;;  %v1234_v54 = vld [vmem:[#allocation2 + $0x2b0] sm:$0xff]  ;;  %v1239_v56 = vld [vmem:[#allocation2 + $0x2d8] sm:$0xff]  ;;  %v1241_v0 = vld [vmem:[#allocation2 + $0x2e8] sm:$0xff] }
 0x180   : > { %3096 = vmatpush3.bf16.msra.mxu0 %v3095_v5  ;;  %v3003_v57 = vpack.c.bf16 %v1234_v54, %v1232_v53  ;;  %v3009_v3 = vpack.c.bf16 %v1243_v1, %v1241_v0  ;;  %v1242_v5 = vld [vmem:[#allocation2 + $0x2f0] sm:$0xff]  ;;  %v1452_v0 = vld [vmem:[#allocation2 + $0x400] sm:$0xff] }
 0x181   : > { %2960 = vmatpush1.bf16.msra.mxu1 %v2959_v9  ;;  %v1607_v9 = vld [vmem:[#allocation5 + $0x58] sm:$0xff]  ;;  %3098 = vmatprep.subr.bf16.mxu0 %v3097_v7  ;;  %v1358_v50 = vld [vmem:[#allocation2 + $0x3d0] sm:$0xff] }
 0x182   : > { %2962 = vmatprep.subr.bf16.mxu1 %v2961_v14  ;;  %v1215_v14 = vld [vmem:[#allocation2 + $0x218] sm:$0xff]  ;;  %v3099_v15 = vpack.c.bf16 %v1607_v9, %v1606_v8  ;;  %v3011_v8 = vpack.c.bf16 %v1242_v5, %v1240_v4  ;;  %v3039_v53 = vpack.c.bf16 %v1358_v50, %v1356_v46  ;;  %v1454_v1 = vld [vmem:[#allocation2 + $0x410] sm:$0xff]  ;;  %v2034_v46 = vld [vmem:[#allocation5 + $0x400] sm:$0xff] }
 0x183   : > { %v2981_v17 = vpack.c.bf16 %v1215_v14, %v1213_v13  ;;  %v1335_v7 = vld [vmem:[#allocation2 + $0x318] sm:$0xff]  ;;  %v3047_v4 = vpack.c.bf16 %v1454_v1, %v1452_v0  ;;  %v2035_v50 = vld [vmem:[#allocation5 + $0x408] sm:$0xff]  ;;  %v2038_v0 = vld [vmem:[#allocation5 + $0x420] sm:$0xff] }
 0x184   : > { %3100 = vmatpush3.bf16.msra.mxu0 %v3099_v15  ;;  %v1339_v13 = vld [vmem:[#allocation2 + $0x338] sm:$0xff]  ;;  %v2039_v1 = vld [vmem:[#allocation5 + $0x428] sm:$0xff] }
 0x185   : > { %2964 = vmatpush1.bf16.msra.mxu1 %v2963_v25  ;;  %v1218_v25 = vld [vmem:[#allocation2 + $0x230] sm:$0xff]  ;;  %v3017_v15 = vpack.c.bf16 %v1339_v13, %v1337_v12  ;;  %v1460_v12 = vld [vmem:[#allocation2 + $0x440] sm:$0xff] }
 0x186   : > { %2966 = vmatprep.subr.bf16.mxu1 %v2965_v29  ;;  %v2987_v28 = vpack.c.bf16 %v1218_v25, %v1216_v24  ;;  %v2989_v29 = vpack.c.bf16 %v1223_v27, %v1221_v26  ;;  %v1345_v24 = vld [vmem:[#allocation2 + $0x368] sm:$0xff]  ;;  %v1347_v25 = vld [vmem:[#allocation2 + $0x378] sm:$0xff]  ;;  %v1462_v13 = vld [vmem:[#allocation2 + $0x450] sm:$0xff] }
 0x187   : > { %v3025_v27 = vpack.c.bf16 %v1347_v25, %v1345_v24  ;;  %v1470_v24 = vld [vmem:[#allocation2 + $0x490] sm:$0xff]  ;;  %v1473_v25 = vld [vmem:[#allocation2 + $0x4a8] sm:$0xff] }
 0x189   : > { %2968 = vmatpush1.bf16.msra.mxu1 %v2967_v38  ;;  %v1229_v38 = vld [vmem:[#allocation2 + $0x288] sm:$0xff] }
 0x18a   : > { %2970 = vmatprep.subr.bf16.mxu1 %v2969_v45  ;;  %v2997_v42 = vpack.c.bf16 %v1231_v39, %v1229_v38  ;;  %v1230_v45 = vld [vmem:[#allocation2 + $0x290] sm:$0xff]  ;;  %v1352_v38 = vld [vmem:[#allocation2 + $0x3a0] sm:$0xff] }
 0x18b   : > { %v2999_v51 = vpack.c.bf16 %v1230_v45, %v1228_v44  ;;  %v1354_v39 = vld [vmem:[#allocation2 + $0x3b0] sm:$0xff] }
 0x18c   : > { %v3035_v44 = vpack.c.bf16 %v1354_v39, %v1352_v38  ;;  %v1480_v38 = vld [vmem:[#allocation2 + $0x4e0] sm:$0xff]  ;;  %v1482_v39 = vld [vmem:[#allocation2 + $0x4f0] sm:$0xff] }
 0x18d   : > { %2972 = vmatpush1.bf16.msra.mxu1 %v2971_v55  ;;  %v1237_v55 = vld [vmem:[#allocation2 + $0x2c8] sm:$0xff] }
 0x18e   : > { %2974 = vmatprep.subr.bf16.mxu1 %v2973_v63  ;;  %v3005_v58 = vpack.c.bf16 %v1239_v56, %v1237_v55  ;;  %v1238_v63 = vld [vmem:[#allocation2 + $0x2d0] sm:$0xff]  ;;  %v1360_v55 = vld [vmem:[#allocation2 + $0x3e0] sm:$0xff] }
 0x18f   : > { %v3007_v2 = vpack.c.bf16 %v1238_v63, %v1236_v59  ;;  %v1362_v56 = vld [vmem:[#allocation2 + $0x3f0] sm:$0xff] }
 0x190   : > { %v3043_v59 = vpack.c.bf16 %v1362_v56, %v1360_v55  ;;  %v2036_v55 = vld [vmem:[#allocation5 + $0x410] sm:$0xff]  ;;  %v2037_v56 = vld [vmem:[#allocation5 + $0x418] sm:$0xff] }
 0x191   : > { %2976 = vmatpush1.bf16.msra.mxu1 %v2975_v6  ;;  %v1333_v6 = vld [vmem:[#allocation2 + $0x308] sm:$0xff] }
 0x192   : > { %2978 = vmatprep.subr.bf16.mxu1 %v2977_v10  ;;  %v3013_v9 = vpack.c.bf16 %v1335_v7, %v1333_v6  ;;  %v1332_v10 = vld [vmem:[#allocation2 + $0x300] sm:$0xff]  ;;  %v1458_v7 = vld [vmem:[#allocation2 + $0x430] sm:$0xff] }
 0x193   : > { %v3015_v14 = vpack.c.bf16 %v1334_v11, %v1332_v10  ;;  %v1456_v6 = vld [vmem:[#allocation2 + $0x420] sm:$0xff] }
 0x194   : > { %v3051_v10 = vpack.c.bf16 %v1458_v7, %v1456_v6  ;;  %v2040_v6 = vld [vmem:[#allocation5 + $0x430] sm:$0xff]  ;;  %v2041_v7 = vld [vmem:[#allocation5 + $0x438] sm:$0xff] }
 0x195   : > { %2980 = vmatpush1.bf16.msra.mxu1 %v2979_v16  ;;  %v1336_v16 = vld [vmem:[#allocation2 + $0x320] sm:$0xff] }
 0x196   : > { %2982 = vmatprep.subr.bf16.mxu1 %v2981_v17  ;;  %v1338_v17 = vld [vmem:[#allocation2 + $0x330] sm:$0xff] }
 0x197   : > { %v3019_v20 = vpack.c.bf16 %v1338_v17, %v1336_v16  ;;  %v3055_v16 = vpack.c.bf16 %v1462_v13, %v1460_v12  ;;  %v2043_v12 = vld [vmem:[#allocation5 + $0x448] sm:$0xff] }
 0x198   : > { %1199 = vmatmul.mubr.f32.vlgmr.msra.gmra.mrb[0].mxu1 %v3872_v43  ;;  %v1226_v43 = vld [vmem:[#allocation2 + $0x270] sm:$0xff] }
 0x199   : > { %2984 = vmatpush1.bf16.msra.mxu1 %v2983_v22  ;;  %1204 = vmatprep.mubr.f32.mxu1 %v3555_v34  ;;  %v2995_v41 = vpack.c.bf16 %v1226_v43, %v1224_v37  ;;  %v1340_v22 = vld [vmem:[#allocation2 + $0x340] sm:$0xff]  ;;  %v1355_v37 = vld [vmem:[#allocation2 + $0x3b8] sm:$0xff] }
 0x19a   : > { %2986 = vmatprep.subr.bf16.mxu1 %v2985_v23  ;;  %v1342_v23 = vld [vmem:[#allocation2 + $0x350] sm:$0xff] }
 0x19b   : > { %v3023_v26 = vpack.c.bf16 %v1342_v23, %v1340_v22  ;;  %v1468_v23 = vld [vmem:[#allocation2 + $0x480] sm:$0xff] }
 0x19c   : > { %1205 = vmatmul.mubr.f32.gmra.mrb[2].mxu1 %v3870_v40  ;;  %v1624_v40 = vld [vmem:[#allocation5 + $0xe0] sm:$0xff] }
 0x19d   : > { %2988 = vmatpush1.bf16.msra.mxu1 %v2987_v28  ;;  %1314 = vmatprep.mubr.f32.mxu1 %v3555_v34  ;;  %v1346_v28 = vld [vmem:[#allocation2 + $0x370] sm:$0xff] }
 0x19e   : > { %2990 = vmatprep.subr.bf16.mxu1 %v2989_v29  ;;  %v1349_v29 = vld [vmem:[#allocation2 + $0x388] sm:$0xff] }
 0x19f   : > { %v3029_v32 = vpack.c.bf16 %v1351_v30, %v1349_v29  ;;  %v1477_v29 = vld [vmem:[#allocation2 + $0x4c8] sm:$0xff]  ;;  %v1479_v30 = vld [vmem:[#allocation2 + $0x4d8] sm:$0xff] }
 0x1a1   : > { %2992 = vmatpush1.bf16.msra.mxu1 %v2991_v35  ;;  %v1350_v35 = vld [vmem:[#allocation2 + $0x390] sm:$0xff] }
 0x1a2   : > { %2994 = vmatprep.subr.bf16.mxu1 %v2993_v36  ;;  %v1353_v36 = vld [vmem:[#allocation2 + $0x3a8] sm:$0xff] }
 0x1a3   : > { %v3033_v43 = vpack.c.bf16 %v1355_v37, %v1353_v36  ;;  %v1481_v36 = vld [vmem:[#allocation2 + $0x4e8] sm:$0xff]  ;;  %v1483_v37 = vld [vmem:[#allocation2 + $0x4f8] sm:$0xff] }
 0x1a5   : > { %2996 = vmatpush1.bf16.msra.mxu1 %v2995_v41  ;;  %v1357_v41 = vld [vmem:[#allocation2 + $0x3c8] sm:$0xff] }
 0x1a6   : > { %2998 = vmatprep.subr.bf16.mxu1 %v2997_v42  ;;  %v1359_v42 = vld [vmem:[#allocation2 + $0x3d8] sm:$0xff] }
 0x1a7   : > { %v3037_v45 = vpack.c.bf16 %v1359_v42, %v1357_v41  ;;  %v2050_v41 = vld [vmem:[#allocation5 + $0x480] sm:$0xff]  ;;  %v2051_v42 = vld [vmem:[#allocation5 + $0x488] sm:$0xff] }
 0x1a9   : > { %3000 = vmatpush1.bf16.msra.mxu1 %v2999_v51  ;;  %v1361_v51 = vld [vmem:[#allocation2 + $0x3e8] sm:$0xff] }
 0x1aa   : > { %3002 = vmatprep.subr.bf16.mxu1 %v3001_v52  ;;  %v1363_v52 = vld [vmem:[#allocation2 + $0x3f8] sm:$0xff] }
 0x1ab   : > { %v3041_v54 = vpack.c.bf16 %v1363_v52, %v1361_v51  ;;  %v2052_v51 = vld [vmem:[#allocation5 + $0x490] sm:$0xff]  ;;  %v2053_v52 = vld [vmem:[#allocation5 + $0x498] sm:$0xff] }
 0x1ad   : > { %3004 = vmatpush1.bf16.msra.mxu1 %v3003_v57  ;;  %v1453_v57 = vld [vmem:[#allocation2 + $0x408] sm:$0xff] }
 0x1ae   : > { %3006 = vmatprep.subr.bf16.mxu1 %v3005_v58  ;;  %v1455_v58 = vld [vmem:[#allocation2 + $0x418] sm:$0xff] }
 0x1af   : > { %v3045_v63 = vpack.c.bf16 %v1455_v58, %v1453_v57  ;;  %v2054_v57 = vld [vmem:[#allocation5 + $0x4a0] sm:$0xff]  ;;  %v2055_v58 = vld [vmem:[#allocation5 + $0x4a8] sm:$0xff] }
 0x1b1   : > { %3008 = vmatpush1.bf16.msra.mxu1 %v3007_v2  ;;  %v1457_v2 = vld [vmem:[#allocation2 + $0x428] sm:$0xff] }
 0x1b2   : > { %3010 = vmatprep.subr.bf16.mxu1 %v3009_v3  ;;  %v1459_v3 = vld [vmem:[#allocation2 + $0x438] sm:$0xff] }
 0x1b3   : > { %v3049_v5 = vpack.c.bf16 %v1459_v3, %v1457_v2  ;;  %v2056_v2 = vld [vmem:[#allocation5 + $0x4b0] sm:$0xff]  ;;  %v2057_v3 = vld [vmem:[#allocation5 + $0x4b8] sm:$0xff] }
 0x1b5   : > { %3012 = vmatpush1.bf16.msra.mxu1 %v3011_v8  ;;  %v1461_v8 = vld [vmem:[#allocation2 + $0x448] sm:$0xff] }
 0x1b6   : > { %3014 = vmatprep.subr.bf16.mxu1 %v3013_v9  ;;  %v1463_v9 = vld [vmem:[#allocation2 + $0x458] sm:$0xff] }
 0x1b7   : > { %v3053_v11 = vpack.c.bf16 %v1463_v9, %v1461_v8  ;;  %v2059_v8 = vld [vmem:[#allocation5 + $0x4c8] sm:$0xff]  ;;  %v3219_v9 = vpack.c.bf16 %v2041_v7, %v2040_v6 }
 0x1b8   : > { %1315 = vmatmul.mubr.f32.vlgmr.msra.gmra.mrb[0].mxu1 %v3886_v60  ;;  %v1344_v60 = vld [vmem:[#allocation2 + $0x360] sm:$0xff] }
 0x1b9   : > { %3016 = vmatpush1.bf16.msra.mxu1 %v3015_v14  ;;  %1320 = vmatprep.mubr.f32.mxu1 %v3555_v34  ;;  %v3027_v31 = vpack.c.bf16 %v1346_v28, %v1344_v60  ;;  %v1465_v14 = vld [vmem:[#allocation2 + $0x468] sm:$0xff]  ;;  %v1472_v60 = vld [vmem:[#allocation2 + $0x4a0] sm:$0xff]  ;;  %v1474_v28 = vld [vmem:[#allocation2 + $0x4b0] sm:$0xff] }
 0x1ba   : > { %3018 = vmatprep.subr.bf16.mxu1 %v3017_v15  ;;  %v1467_v15 = vld [vmem:[#allocation2 + $0x478] sm:$0xff] }
 0x1bb   : > { %v3057_v17 = vpack.c.bf16 %v1467_v15, %v1465_v14  ;;  %v1608_v15 = vld [vmem:[#allocation5 + $0x60] sm:$0xff] }
 0x1bc   : > { %1321 = vmatmul.mubr.f32.gmra.mrb[2].mxu1 %v1246_v47  ;;  %v3031_v47 = vpack.c.bf16 %v1350_v35, %v1348_v33  ;;  %v1476_v33 = vld [vmem:[#allocation2 + $0x4c0] sm:$0xff]  ;;  %v1478_v35 = vld [vmem:[#allocation2 + $0x4d0] sm:$0xff] }
 0x1bd   : > { %3020 = vmatpush1.bf16.msra.mxu1 %v3019_v20  ;;  %1434 = vmatprep.mubr.f32.mxu1 %v3555_v34  ;;  %v1471_v20 = vld [vmem:[#allocation2 + $0x498] sm:$0xff] }
 0x1be   : > { %3022 = vmatprep.subr.bf16.mxu1 %v3021_v21  ;;  %v3061_v22 = vpack.c.bf16 %v1471_v20, %v1469_v19  ;;  %v2044_v19 = vld [vmem:[#allocation5 + $0x450] sm:$0xff] }
 0x1c1   : > { %3024 = vmatpush1.bf16.msra.mxu1 %v3023_v26  ;;  %v1475_v26 = vld [vmem:[#allocation2 + $0x4b8] sm:$0xff] }
 0x1c2   : > { %3026 = vmatprep.subr.bf16.mxu1 %v3025_v27  ;;  %v3065_v27 = vpack.c.bf16 %v1475_v26, %v1473_v25  ;;  %v1610_v26 = vld [vmem:[#allocation5 + $0x70] sm:$0xff] }
 0x1c5   : > { %3028 = vmatpush1.bf16.msra.mxu1 %v3027_v31  ;;  %v3067_v31 = vpack.c.bf16 %v1474_v28, %v1472_v60  ;;  %v2063_v28 = vld [vmem:[#allocation5 + $0x4e8] sm:$0xff] }
 0x1c6   : > { %3030 = vmatprep.subr.bf16.mxu1 %v3029_v32  ;;  %v3069_v32 = vpack.c.bf16 %v1479_v30, %v1477_v29  ;;  %v2046_v29 = vld [vmem:[#allocation5 + $0x460] sm:$0xff]  ;;  %v2047_v30 = vld [vmem:[#allocation5 + $0x468] sm:$0xff] }
 0x1c9   : > { %3032 = vmatpush1.bf16.msra.mxu1 %v3031_v47  ;;  %v3071_v47 = vpack.c.bf16 %v1478_v35, %v1476_v33  ;;  %v1716_v33 = vld [vmem:[#allocation5 + $0x180] sm:$0xff]  ;;  %v1717_v35 = vld [vmem:[#allocation5 + $0x188] sm:$0xff] }
 0x1ca   : > { %3034 = vmatprep.subr.bf16.mxu1 %v3033_v43  ;;  %v3073_v43 = vpack.c.bf16 %v1483_v37, %v1481_v36  ;;  %v3109_v36 = vpack.c.bf16 %v1717_v35, %v1716_v33  ;;  %v2064_v37 = vld [vmem:[#allocation5 + $0x4f0] sm:$0xff]  ;;  %v1711_v35 = vld [vmem:[#allocation5 + $0x158] sm:$0xff] }
 0x1cb   : > { %v1710_v33 = vld [vmem:[#allocation5 + $0x150] sm:$0xff] }
 0x1cd   : > { %3036 = vmatpush1.bf16.msra.mxu1 %v3035_v44  ;;  %v3075_v44 = vpack.c.bf16 %v1482_v39, %v1480_v38  ;;  %v2048_v38 = vld [vmem:[#allocation5 + $0x470] sm:$0xff]  ;;  %v2049_v39 = vld [vmem:[#allocation5 + $0x478] sm:$0xff] }
 0x1ce   : > { %3038 = vmatprep.subr.bf16.mxu1 %v3037_v45  ;;  %v3205_v45 = vpack.c.bf16 %v2051_v42, %v2050_v41  ;;  %v3235_v41 = vpack.c.bf16 %v2049_v39, %v2048_v38  ;;  %v1573_v42 = vlaneseq  ;;  %v1712_v38 = vld [vmem:[#allocation5 + $0x160] sm:$0xff]  ;;  %v1713_v39 = vld [vmem:[#allocation5 + $0x168] sm:$0xff] }
 0x1d1   : > { %3040 = vmatpush1.bf16.msra.mxu1 %v3039_v53  ;;  %v3207_v53 = vpack.c.bf16 %v2035_v50, %v2034_v46  ;;  %v1571_v46 = vld [vmem:[%s4061_s4] sm:$0x3] }
 0x1d2   : > { %3042 = vmatprep.subr.bf16.mxu1 %v3041_v54  ;;  %v3209_v54 = vpack.c.bf16 %v2053_v52, %v2052_v51 }
 0x1d5   : > { %3044 = vmatpush1.bf16.msra.mxu1 %v3043_v59  ;;  %v3211_v59 = vpack.c.bf16 %v2037_v56, %v2036_v55 }
 0x1d6   : > { %3046 = vmatprep.subr.bf16.mxu1 %v3045_v63  ;;  %v3213_v63 = vpack.c.bf16 %v2055_v58, %v2054_v57  ;;  %v1700_v58 = vld [vmem:[#allocation5 + $0x100] sm:$0xff] }
 0x1d8   : > { %1435 = vmatmul.mubr.f32.vlgmr.msra.gmra.mrb[0].mxu1 %v3891_v61  ;;  %v1464_v61 = vld [vmem:[#allocation2 + $0x460] sm:$0xff] }
 0x1d9   : > { %3048 = vmatpush1.bf16.msra.mxu1 %v3047_v4  ;;  %1440 = vmatprep.mubr.f32.mxu1 %v3555_v34  ;;  %v3059_v21 = vpack.c.bf16 %v1466_v18, %v1464_v61  ;;  %v3215_v4 = vpack.c.bf16 %v2039_v1, %v2038_v0  ;;  %v2060_v61 = vld [vmem:[#allocation5 + $0x4d0] sm:$0xff]  ;;  %v2061_v18 = vld [vmem:[#allocation5 + $0x4d8] sm:$0xff] }
 0x1da   : > { %3050 = vmatprep.subr.bf16.mxu1 %v3049_v5  ;;  %v3217_v5 = vpack.c.bf16 %v2057_v3, %v2056_v2  ;;  %v3225_v20 = vpack.c.bf16 %v2061_v18, %v2060_v61  ;;  %v1718_v1 = vld [vmem:[#allocation5 + $0x190] sm:$0xff]  ;;  %v1719_v2 = vld [vmem:[#allocation5 + $0x198] sm:$0xff]  ;;  %v1704_v61 = vld [vmem:[#allocation5 + $0x120] sm:$0xff] }
 0x1db   : > { %v1705_v18 = vld [vmem:[#allocation5 + $0x128] sm:$0xff] }
 0x1dc   : > { %1441 = vmatmul.mubr.f32.gmra.mrb[2].mxu1 %v1366_v48  ;;  %v3063_v48 = vpack.c.bf16 %v1470_v24, %v1468_v23  ;;  %v1626_v23 = vld [vmem:[#allocation5 + $0xf0] sm:$0xff]  ;;  %v1627_v24 = vld [vmem:[#allocation5 + $0xf8] sm:$0xff] }
 0x1dd   : > { %3052 = vmatpush1.bf16.msra.mxu1 %v3051_v10  ;;  %1554 = vmatprep.mubr.f32.mxu1 %v3555_v34  ;;  %v3105_v25 = vpack.c.bf16 %v1627_v24, %v1626_v23  ;;  %v1706_v23 = vld [vmem:[#allocation5 + $0x130] sm:$0xff]  ;;  %v1707_v24 = vld [vmem:[#allocation5 + $0x138] sm:$0xff] }
 0x1de   : > { %3054 = vmatprep.subr.bf16.mxu1 %v3053_v11  ;;  %v2042_v11 = vld [vmem:[#allocation5 + $0x440] sm:$0xff] }
 0x1df   : > { %v3223_v13 = vpack.c.bf16 %v2043_v12, %v2042_v11  ;;  %v1703_v11 = vld [vmem:[#allocation5 + $0x118] sm:$0xff] }
 0x1e1   : > { %3056 = vmatpush1.bf16.msra.mxu1 %v3055_v16  ;;  %v1609_v16 = vld [vmem:[#allocation5 + $0x68] sm:$0xff] }
 0x1e2   : > { %3058 = vmatprep.subr.bf16.mxu1 %v3057_v17  ;;  %v3103_v17 = vpack.c.bf16 %v1609_v16, %v1608_v15 }
 0x1e5   : > { %3060 = vmatpush1.bf16.msra.mxu1 %v3059_v21  ;;  %v2045_v21 = vld [vmem:[#allocation5 + $0x458] sm:$0xff] }
 0x1e6   : > { %3062 = vmatprep.subr.bf16.mxu1 %v3061_v22  ;;  %v3227_v22 = vpack.c.bf16 %v2045_v21, %v2044_v19  ;;  %v1722_v19 = vld [vmem:[#allocation5 + $0x1b0] sm:$0xff]  ;;  %v3119_v21 = vpack.c.bf16 %v1705_v18, %v1704_v61 }
 0x1e9   : > { %3064 = vmatpush1.bf16.msra.mxu1 %v3063_v48  ;;  %v1611_v48 = vld [vmem:[#allocation5 + $0x78] sm:$0xff] }
 0x1ea   : > { %3066 = vmatprep.subr.bf16.mxu1 %v3065_v27  ;;  %v2062_v27 = vld [vmem:[#allocation5 + $0x4e0] sm:$0xff]  ;;  %v3107_v60 = vpack.c.bf16 %v1611_v48, %v1610_v26  ;;  %v1725_v26 = vld [vmem:[#allocation5 + $0x1c8] sm:$0xff]  ;;  %v3123_v48 = vpack.c.bf16 %v1707_v24, %v1706_v23 }
 0x1ed   : > { %3068 = vmatpush1.bf16.msra.mxu1 %v3067_v31  ;;  %v3229_v31 = vpack.c.bf16 %v2063_v28, %v2062_v27  ;;  %v1709_v28 = vld [vmem:[#allocation5 + $0x148] sm:$0xff] }
 0x1ee   : > { %3070 = vmatprep.subr.bf16.mxu1 %v3069_v32  ;;  %v3231_v32 = vpack.c.bf16 %v2047_v30, %v2046_v29  ;;  %v1726_v29 = vld [vmem:[#allocation5 + $0x1d0] sm:$0xff]  ;;  %v1727_v30 = vld [vmem:[#allocation5 + $0x1d8] sm:$0xff] }
 0x1f1   : > { %3072 = vmatpush1.bf16.msra.mxu1 %v3071_v47  ;;  %v2065_v47 = vld [vmem:[#allocation5 + $0x4f8] sm:$0xff] }
 0x1f2   : > { %3074 = vmatprep.subr.bf16.mxu1 %v3073_v43  ;;  %v3233_v43 = vpack.c.bf16 %v2065_v47, %v2064_v37  ;;  %v1729_v37 = vld [vmem:[#allocation5 + $0x1e8] sm:$0xff]  ;;  %v3131_v47 = vpack.c.bf16 %v1711_v35, %v1710_v33 }
 0x1f5   : > { %3076 = vmatpush1.bf16.msra.mxu1 %v3075_v44  ;;  %v1574_v44 = vshrl.u32 %v1573_v42, 7 }
 0x1f6   : > { %3206 = vmatprep.subr.bf16.mxu1 %v3205_v45 }
 0x1f7   : > { %v1575_v45 = vsub.s32 0, %v1574_v44  ;;  %v1579_v50 = vsub.s32 1, %v1574_v44  ;;  %v1731_v44 = vld [vmem:[#allocation5 + $0x1f8] sm:$0xff] }
 0x1f8   : > { %1555 = vmatmul.mubr.f32.vlgmr.msra.gmra.mrb[0].mxu1 %v3896_v62  ;;  %v2058_v62 = vld [vmem:[#allocation5 + $0x4c0] sm:$0xff] }
 0x1f9   : > { %1560 = vmatprep.mubr.f32.mxu1 %v3555_v34  ;;  %3208 = vmatpush3.bf16.msra.mxu1 %v3207_v53  ;;  %v3221_v10 = vpack.c.bf16 %v2059_v8, %v2058_v62  ;;  %v1576_v51 = vrot.slane %v1571_v46, %v1575_v45  ;;  %v1580_v52 = vrot.slane %v1571_v46, %v1579_v50  ;;  %v1714_v50 = vld [vmem:[#allocation5 + $0x170] sm:$0xff] }
 0x1fa   : > { %3210 = vmatprep.subr.bf16.mxu1 %v3209_v54  ;;  %v3135_v45 = vpack.c.bf16 %v1713_v39, %v1712_v38 }
 0x1fc   : > { %1561 = vmatmul.mubr.f32.gmra.mrb[2].mxu1 %v1486_v49  ;;  %v1625_v49 = vld [vmem:[#allocation5 + $0xe8] sm:$0xff] }
 0x1fd   : > { %3212 = vmatpush3.bf16.msra.mxu1 %v3211_v59  ;;  %v3101_v14 = vpack.c.bf16 %v1625_v49, %v1624_v40  ;;  %v1701_v59 = vld [vmem:[#allocation5 + $0x108] sm:$0xff]  ;;  %v1720_v40 = vld [vmem:[#allocation5 + $0x1a0] sm:$0xff] }
 0x1fe   : > { %3214 = vmatprep.subr.bf16.mxu1 %v3213_v63  ;;  %v3111_v7 = vpack.c.bf16 %v1701_v59, %v1700_v58  ;;  %v1721_v49 = vld [vmem:[#allocation5 + $0x1a8] sm:$0xff]  ;;  %v1828_v58 = vld [vmem:[#allocation5 + $0x290] sm:$0xff]  ;;  %v1829_v59 = vld [vmem:[#allocation5 + $0x298] sm:$0xff] }
 0x1ff   : > { %3102 = vmatprep.subr.bf16.mxu0 %v3101_v14 }
 0x200   : > { %3104 = vmatpush3.bf16.msra.mxu0 %v3103_v17  ;;  %v3117_v17 = vpack.c.bf16 %v1721_v49, %v1720_v40 }
 0x201   : > { %3216 = vmatpush3.bf16.msra.mxu1 %v3215_v4  ;;  %3106 = vmatprep.subr.bf16.mxu0 %v3105_v25  ;;  %v1724_v25 = vld [vmem:[#allocation5 + $0x1c0] sm:$0xff] }
 0x202   : > { %3218 = vmatprep.subr.bf16.mxu1 %v3217_v5  ;;  %v3125_v27 = vpack.c.bf16 %v1725_v26, %v1724_v25  ;;  %v1820_v25 = vld [vmem:[#allocation5 + $0x250] sm:$0xff]  ;;  %v1821_v26 = vld [vmem:[#allocation5 + $0x258] sm:$0xff] }
 0x204   : > { %3108 = vmatpush3.bf16.msra.mxu0 %v3107_v60  ;;  %v1708_v60 = vld [vmem:[#allocation5 + $0x140] sm:$0xff] }
 0x205   : > { %3220 = vmatpush3.bf16.msra.mxu1 %v3219_v9  ;;  %3110 = vmatprep.subr.bf16.mxu0 %v3109_v36  ;;  %v3113_v9 = vpack.c.bf16 %v1719_v2, %v1718_v1  ;;  %v1728_v36 = vld [vmem:[#allocation5 + $0x1e0] sm:$0xff]  ;;  %v3145_v1 = vpack.c.bf16 %v1829_v59, %v1828_v58  ;;  %v1812_v2 = vld [vmem:[#allocation5 + $0x210] sm:$0xff] }
 0x206   : > { %3222 = vmatprep.subr.bf16.mxu1 %v3221_v10  ;;  %v1702_v10 = vld [vmem:[#allocation5 + $0x110] sm:$0xff] }
 0x207   : > { %v3115_v15 = vpack.c.bf16 %v1703_v11, %v1702_v10  ;;  %v1814_v10 = vld [vmem:[#allocation5 + $0x220] sm:$0xff]  ;;  %v1815_v11 = vld [vmem:[#allocation5 + $0x228] sm:$0xff] }
 0x208   : > { %v3151_v40 = vpack.c.bf16 %v1815_v11, %v1814_v10  ;;  %v1926_v11 = vld [vmem:[#allocation5 + $0x340] sm:$0xff] }
 0x209   : > { %3224 = vmatpush3.bf16.msra.mxu1 %v3223_v13 }
 0x20a   : > { %3226 = vmatprep.subr.bf16.mxu1 %v3225_v20  ;;  %v1723_v20 = vld [vmem:[#allocation5 + $0x1b8] sm:$0xff] }
 0x20d   : > { %3228 = vmatpush3.bf16.msra.mxu1 %v3227_v22  ;;  %v3121_v22 = vpack.c.bf16 %v1723_v20, %v1722_v19  ;;  %v1818_v19 = vld [vmem:[#allocation5 + $0x240] sm:$0xff]  ;;  %v1819_v20 = vld [vmem:[#allocation5 + $0x248] sm:$0xff] }
 0x20e   : > { %3230 = vmatprep.subr.bf16.mxu1 %v3229_v31  ;;  %v3127_v31 = vpack.c.bf16 %v1709_v28, %v1708_v60  ;;  %v3159_v23 = vpack.c.bf16 %v1819_v20, %v1818_v19  ;;  %v3163_v60 = vpack.c.bf16 %v1821_v26, %v1820_v25  ;;  %v1930_v20 = vld [vmem:[#allocation5 + $0x360] sm:$0xff]  ;;  %v1932_v26 = vld [vmem:[#allocation5 + $0x370] sm:$0xff] }
 0x211   : > { %3232 = vmatpush3.bf16.msra.mxu1 %v3231_v32  ;;  %v3129_v32 = vpack.c.bf16 %v1727_v30, %v1726_v29  ;;  %v1822_v29 = vld [vmem:[#allocation5 + $0x260] sm:$0xff]  ;;  %v1823_v30 = vld [vmem:[#allocation5 + $0x268] sm:$0xff] }
 0x212   : > { %3234 = vmatprep.subr.bf16.mxu1 %v3233_v43  ;;  %v3133_v43 = vpack.c.bf16 %v1729_v37, %v1728_v36  ;;  %v3167_v33 = vpack.c.bf16 %v1823_v30, %v1822_v29  ;;  %v1824_v36 = vld [vmem:[#allocation5 + $0x270] sm:$0xff]  ;;  %v1825_v37 = vld [vmem:[#allocation5 + $0x278] sm:$0xff]  ;;  %v2138_v29 = vld [vmem:[%s4064_s7 + $0x8] sm:$0xff] }
 0x213   : > { %v3171_v38 = vpack.c.bf16 %v1825_v37, %v1824_v36  ;;  %v2139_v30 = vld [vmem:[%s4064_s7 + $0x10] sm:$0xff]  ;;  %v2142_v36 = vld [vmem:[%s4064_s7 + $0x28] sm:$0xff] }
 0x215   : > { %3236 = vmatpush3.bf16.msra.mxu1 %v3235_v41  ;;  %v1730_v41 = vld [vmem:[#allocation5 + $0x1f0] sm:$0xff] }
 0x216   : > { %v3137_v46 = vpack.c.bf16 %v1731_v44, %v1730_v41  ;;  %v1918_v41 = vld [vmem:[#allocation5 + $0x300] sm:$0xff]  ;;  %v1919_v44 = vld [vmem:[#allocation5 + $0x308] sm:$0xff] }
 0x2cb   : > { %v1556_v53 = vpop.f32.mrb[0].mxu1 }
 0x2cc   : > { %v1583_v54 = vadd.f32 %v1576_v51, %v1556_v53  ;;  %v1558_v55 = vpop.f32.mrb[1].mxu1  ;;  %v1827_v53 = vld [vmem:[#allocation5 + $0x288] sm:$0xff] }
 0x2cd   : > { %v1584_v56 = vadd.f32 %v1580_v52, %v1558_v55 }
 0x2ce   : > { %v1590_v57 = vrot.slane %v1583_v54, 1 }
 0x2cf   : > { %v1591_v63 = vrot.slane %v1584_v56, 1  ;;  %v1562_v0 = vpop.f32.mrb[2].mxu1 }
 0x2d0   : > { %v1585_v3 = vadd.f32 %v1576_v51, %v1562_v0  ;;  %v1564_v4 = vpop.f32.mrb[3].mxu1  ;;  %v3924_v62 = vadd.f32 %v1590_v57, %v1583_v54  ;;  %v1715_v51 = vld [vmem:[#allocation5 + $0x178] sm:$0xff]  ;;  %v1811_v57 = vld [vmem:[#allocation5 + $0x208] sm:$0xff] }
 0x2d1   : > { %v3922_v5 = vadd.f32 %v1591_v63, %v1584_v56  ;;  %v1586_v6 = vadd.f32 %v1580_v52, %v1564_v4  ;;  %v1826_v52 = vld [vmem:[#allocation5 + $0x280] sm:$0xff]  ;;  %v3139_v54 = vpack.c.bf16 %v1715_v51, %v1714_v50  ;;  %v3175_v50 = vpack.c.bf16 %v1919_v44, %v1918_v41  ;;  %v2146_v41 = vld [vmem:[%s4064_s7 + $0x48] sm:$0xff] }
 0x2d2   : > { %v2027_v8 = vrot.slane %v1585_v3, 1  ;;  %v3141_v55 = vpack.c.bf16 %v1827_v53, %v1826_v52  ;;  %v1810_v56 = vld [vmem:[#allocation5 + $0x200] sm:$0xff]  ;;  %v1734_v0 = vrot.slane %v3924_v62, 2  ;;  %v1842_v51 = vrot.slane %v3924_v62, 4  ;;  %v1920_v53 = vld [vmem:[#allocation5 + $0x310] sm:$0xff] }
 0x2d3   : > { %v2028_v12 = vrot.slane %v1586_v6, 1  ;;  %1692 = vmatprep.mubr.f32.mxu0 %v3922_v5  ;;  %v1735_v13 = vrot.slane %v3922_v5, 2  ;;  %v3143_v63 = vpack.c.bf16 %v1811_v57, %v1810_v56  ;;  %v1843_v4 = vrot.slane %v3922_v5, 4  ;;  %v1938_v56 = vld [vmem:[#allocation5 + $0x3a0] sm:$0xff]  ;;  %v1939_v57 = vld [vmem:[#allocation5 + $0x3a8] sm:$0xff] }
 0x2d4   : > { %1693 = vmatmul.mubr.f32.vlgmr.msra.gmra.mrb[2].mxu0 %v3924_v62  ;;  %v2031_v16 = vadd.f32 %v2027_v8, %v1585_v3  ;;  %v1813_v3 = vld [vmem:[#allocation5 + $0x218] sm:$0xff]  ;;  %v3181_v59 = vpack.c.bf16 %v1939_v57, %v1938_v56  ;;  %v2224_v57 = vld [vmem:[#allocation7] sm:$0xff] }
 0x2d5   : > { %v2032_v14 = vadd.f32 %v2028_v12, %v1586_v6  ;;  %3112 = vmatpush3.bf16.msra.mxu0 %v3111_v7  ;;  %1802 = vmatprep.mubr.f32.mxu0 %v1735_v13  ;;  %v1830_v6 = vld [vmem:[#allocation5 + $0x2a0] sm:$0xff]  ;;  %v1831_v7 = vld [vmem:[#allocation5 + $0x2a8] sm:$0xff]  ;;  %v3147_v8 = vpack.c.bf16 %v1813_v3, %v1812_v2  ;;  %v1832_v12 = vld [vmem:[#allocation5 + $0x2b0] sm:$0xff] }
 0x2d6   : > { %3114 = vmatprep.subr.bf16.mxu0 %v3113_v9  ;;  %v3149_v9 = vpack.c.bf16 %v1831_v7, %v1830_v6  ;;  %v1833_v13 = vld [vmem:[#allocation5 + $0x2b8] sm:$0xff]  ;;  %v1924_v6 = vld [vmem:[#allocation5 + $0x330] sm:$0xff] }
 0x2d7   : > { %2130 = vmatprep.mubr.f32.mxu1 %v2032_v14  ;;  %v3153_v49 = vpack.c.bf16 %v1833_v13, %v1832_v12  ;;  %v1816_v14 = vld [vmem:[#allocation5 + $0x230] sm:$0xff]  ;;  %v1941_v2 = vld [vmem:[#allocation5 + $0x3b8] sm:$0xff]  ;;  %v1927_v12 = vld [vmem:[#allocation5 + $0x348] sm:$0xff] }
 0x2d8   : > { %2131 = vmatmul.mubr.f32.vlgmr.msra.gmra.mrb[4].mxu1 %v2031_v16  ;;  %v1834_v16 = vld [vmem:[#allocation5 + $0x2c0] sm:$0xff]  ;;  %v1925_v7 = vld [vmem:[#allocation5 + $0x338] sm:$0xff]  ;;  %v1944_v13 = vld [vmem:[#allocation5 + $0x3d0] sm:$0xff] }
 0x2d9   : > { %3116 = vmatpush3.bf16.msra.mxu0 %v3115_v15  ;;  %v1817_v15 = vld [vmem:[#allocation5 + $0x238] sm:$0xff]  ;;  %2866 = vmatprep.mubr.msk.f32.mxu1 %vm3557_vm5, %v3555_v34 }
 0x2da   : > { %3118 = vmatprep.subr.bf16.mxu0 %v3117_v17  ;;  %v1835_v17 = vld [vmem:[#allocation5 + $0x2c8] sm:$0xff]  ;;  %v3155_v61 = vpack.c.bf16 %v1817_v15, %v1816_v14  ;;  %v1928_v15 = vld [vmem:[#allocation5 + $0x350] sm:$0xff] }
 0x2db   : > { %v3157_v18 = vpack.c.bf16 %v1835_v17, %v1834_v16  ;;  %v1929_v16 = vld [vmem:[#allocation5 + $0x358] sm:$0xff]  ;;  %v1946_v17 = vld [vmem:[#allocation5 + $0x3e0] sm:$0xff] }
 0x2dd   : > { %3120 = vmatpush3.bf16.msra.mxu0 %v3119_v21  ;;  %v1836_v21 = vld [vmem:[#allocation5 + $0x2d0] sm:$0xff] }
 0x2de   : > { %3122 = vmatprep.subr.bf16.mxu0 %v3121_v22  ;;  %v1837_v22 = vld [vmem:[#allocation5 + $0x2d8] sm:$0xff] }
 0x2df   : > { %v3161_v24 = vpack.c.bf16 %v1837_v22, %v1836_v21  ;;  %v1931_v21 = vld [vmem:[#allocation5 + $0x368] sm:$0xff]  ;;  %v1948_v22 = vld [vmem:[#allocation5 + $0x3f0] sm:$0xff] }
 0x2e1   : > { %3124 = vmatpush3.bf16.msra.mxu0 %v3123_v48  ;;  %v1838_v48 = vld [vmem:[#allocation5 + $0x2e0] sm:$0xff] }
 0x2e2   : > { %3126 = vmatprep.subr.bf16.mxu0 %v3125_v27  ;;  %v1839_v27 = vld [vmem:[#allocation5 + $0x2e8] sm:$0xff] }
 0x2e3   : > { %v3165_v28 = vpack.c.bf16 %v1839_v27, %v1838_v48  ;;  %v1933_v48 = vld [vmem:[#allocation5 + $0x378] sm:$0xff] }
 0x2e4   : > { %v3203_v27 = vpack.c.bf16 %v1933_v48, %v1932_v26 }
 0x2e5   : > { %3128 = vmatpush3.bf16.msra.mxu0 %v3127_v31  ;;  %v1840_v31 = vld [vmem:[#allocation5 + $0x2f0] sm:$0xff] }
 0x2e6   : > { %3130 = vmatprep.subr.bf16.mxu0 %v3129_v32  ;;  %v1841_v32 = vld [vmem:[#allocation5 + $0x2f8] sm:$0xff] }
 0x2e7   : > { %v3169_v35 = vpack.c.bf16 %v1841_v32, %v1840_v31  ;;  %v3556_v31 = vmov 0.0|0.0  }
 0x2e8   : > { %3261 = vmatprep.subr.bf16.mxu1 %v3556_v31 }
 0x2e9   : > { %3132 = vmatpush3.bf16.msra.mxu0 %v3131_v47  ;;  %v1934_v47 = vld [vmem:[#allocation5 + $0x380] sm:$0xff] }
 0x2ea   : > { %3134 = vmatprep.subr.bf16.mxu0 %v3133_v43  ;;  %v1935_v43 = vld [vmem:[#allocation5 + $0x388] sm:$0xff] }
 0x2eb   : > { %v3173_v39 = vpack.c.bf16 %v1935_v43, %v1934_v47  ;;  %v2143_v47 = vld [vmem:[%s4064_s7 + $0x30] sm:$0xff]  ;;  %v2144_v43 = vld [vmem:[%s4064_s7 + $0x38] sm:$0xff] }
 0x2ed   : > { %3136 = vmatpush3.bf16.msra.mxu0 %v3135_v45  ;;  %v1936_v45 = vld [vmem:[#allocation5 + $0x390] sm:$0xff] }
 0x2ee   : > { %3138 = vmatprep.subr.bf16.mxu0 %v3137_v46  ;;  %v1937_v46 = vld [vmem:[#allocation5 + $0x398] sm:$0xff] }
 0x2ef   : > { %v3177_v52 = vpack.c.bf16 %v1937_v46, %v1936_v45  ;;  %v2147_v45 = vld [vmem:[%s4064_s7 + $0x50] sm:$0xff]  ;;  %v2148_v46 = vld [vmem:[%s4064_s7 + $0x58] sm:$0xff] }
 0x2f1   : > { %3140 = vmatpush3.bf16.msra.mxu0 %v3139_v54  ;;  %v1921_v54 = vld [vmem:[#allocation5 + $0x318] sm:$0xff] }
 0x2f2   : > { %3142 = vmatprep.subr.bf16.mxu0 %v3141_v55  ;;  %v1951_v55 = vrot.slane %v3922_v5, 6  ;;  %v3179_v58 = vpack.c.bf16 %v1921_v54, %v1920_v53  ;;  %v1943_v5 = vld [vmem:[#allocation5 + $0x3c8] sm:$0xff]  ;;  %v2151_v54 = vld [vmem:[%s4064_s7 + $0x70] sm:$0xff] }
 0x2f4   : > { %1803 = vmatmul.mubr.f32.vlgmr.msra.gmra.mrb[4].mxu0 %v1734_v0  ;;  %v1923_v0 = vld [vmem:[#allocation5 + $0x328] sm:$0xff] }
 0x2f5   : > { %3144 = vmatpush3.bf16.msra.mxu0 %v3143_v63  ;;  %1910 = vmatprep.mubr.f32.mxu0 %v1843_v4  ;;  %v1922_v63 = vld [vmem:[#allocation5 + $0x320] sm:$0xff] }
 0x2f6   : > { %3146 = vmatprep.subr.bf16.mxu0 %v3145_v1  ;;  %v1940_v1 = vld [vmem:[#allocation5 + $0x3b0] sm:$0xff]  ;;  %v3183_v3 = vpack.c.bf16 %v1923_v0, %v1922_v63  ;;  %v2227_v0 = vld [vmem:[#allocation7 + $0x18] sm:$0xff] }
 0x2f7   : > { %v3185_v4 = vpack.c.bf16 %v1941_v2, %v1940_v1  ;;  %v2228_v2 = vld [vmem:[#allocation7 + $0x20] sm:$0xff] }
 0x2f9   : > { %3148 = vmatpush3.bf16.msra.mxu0 %v3147_v8  ;;  %v1942_v8 = vld [vmem:[#allocation5 + $0x3c0] sm:$0xff] }
 0x2fa   : > { %3150 = vmatprep.subr.bf16.mxu0 %v3149_v9  ;;  %v3187_v9 = vpack.c.bf16 %v1925_v7, %v1924_v6  ;;  %v3189_v10 = vpack.c.bf16 %v1943_v5, %v1942_v8  ;;  %v2230_v6 = vld [vmem:[#allocation7 + $0x30] sm:$0xff]  ;;  %v2231_v7 = vld [vmem:[#allocation7 + $0x38] sm:$0xff]  ;;  %v2233_v5 = vld [vmem:[#allocation7 + $0x48] sm:$0xff] }
 0x2fb   : > { %v3271_v8 = vpack.c.bf16 %v2231_v7, %v2230_v6 }
 0x2fd   : > { %3152 = vmatpush3.bf16.msra.mxu0 %v3151_v40  ;;  %v1945_v40 = vld [vmem:[#allocation5 + $0x3d8] sm:$0xff] }
 0x2fe   : > { %3154 = vmatprep.subr.bf16.mxu0 %v3153_v49  ;;  %v3191_v49 = vpack.c.bf16 %v1927_v12, %v1926_v11  ;;  %v3193_v14 = vpack.c.bf16 %v1945_v40, %v1944_v13  ;;  %v2235_v11 = vld [vmem:[#allocation7 + $0x58] sm:$0xff]  ;;  %v2236_v13 = vld [vmem:[#allocation7 + $0x60] sm:$0xff]  ;;  %v2237_v40 = vld [vmem:[#allocation7 + $0x68] sm:$0xff] }
 0x301   : > { %3156 = vmatpush3.bf16.msra.mxu0 %v3155_v61  ;;  %v1947_v61 = vld [vmem:[#allocation5 + $0x3e8] sm:$0xff] }
 0x302   : > { %3158 = vmatprep.subr.bf16.mxu0 %v3157_v18  ;;  %v3195_v18 = vpack.c.bf16 %v1929_v16, %v1928_v15  ;;  %v3197_v19 = vpack.c.bf16 %v1947_v61, %v1946_v17 }
 0x305   : > { %3160 = vmatpush3.bf16.msra.mxu0 %v3159_v23  ;;  %v1949_v23 = vld [vmem:[#allocation5 + $0x3f8] sm:$0xff] }
 0x306   : > { %3162 = vmatprep.subr.bf16.mxu0 %v3161_v24  ;;  %v3199_v24 = vpack.c.bf16 %v1931_v21, %v1930_v20  ;;  %v3201_v25 = vpack.c.bf16 %v1949_v23, %v1948_v22 }
 0x309   : > { %3164 = vmatpush3.bf16.msra.mxu0 %v3163_v60  ;;  %v1950_v60 = vrot.slane %v3924_v62, 6  ;;  %v2140_v62 = vld [vmem:[%s4064_s7 + $0x18] sm:$0xff] }
 0x30a   : > { %3166 = vmatprep.subr.bf16.mxu0 %v3165_v28  ;;  %v2137_v28 = vld [vmem:[%s4064_s7] sm:$0xff] }
 0x30b   : > { %v3238_v32 = vpack.c.bf16 %v2138_v29, %v2137_v28 }
 0x30d   : > { %3168 = vmatpush3.bf16.msra.mxu0 %v3167_v33  ;;  %v3241_v33 = vpack.c.bf16 %v2140_v62, %v2139_v30  ;;  %v2239_v62 = vld [vmem:[#allocation7 + $0x78] sm:$0xff] }
 0x30e   : > { %3170 = vmatprep.subr.bf16.mxu0 %v3169_v35  ;;  %v2141_v35 = vld [vmem:[%s4064_s7 + $0x20] sm:$0xff] }
 0x30f   : > { %v3244_v37 = vpack.c.bf16 %v2142_v36, %v2141_v35  ;;  %v2153_v35 = vld [vmem:[%s4065_s8] sm:$0x1] }
 0x311   : > { %3172 = vmatpush3.bf16.msra.mxu0 %v3171_v38  ;;  %v3247_v38 = vpack.c.bf16 %v2144_v43, %v2143_v47  ;;  %v2312_v43 = vand.u32 127, %v1573_v42 }
 0x312   : > { %3174 = vmatprep.subr.bf16.mxu0 %v3173_v39  ;;  %v2145_v39 = vld [vmem:[%s4064_s7 + $0x40] sm:$0xff] }
 0x313   : > { %v3250_v44 = vpack.c.bf16 %v2146_v41, %v2145_v39  ;;  %vm2313_vm6 = vcmp.lt.s32.totalorder %v2312_v43, 10 }
 0x314   : > { %1911 = vmatmul.mubr.f32.vlgmr.msra.gmra.mrb[6].mxu0 %v1842_v51  ;;  %v2149_v51 = vld [vmem:[%s4064_s7 + $0x60] sm:$0xff] }
 0x315   : > { %3176 = vmatpush3.bf16.msra.mxu0 %v3175_v50  ;;  %2018 = vmatprep.mubr.f32.mxu0 %v1951_v55  ;;  %v3253_v50 = vpack.c.bf16 %v2148_v46, %v2147_v45  ;;  %v2152_v55 = vld [vmem:[%s4064_s7 + $0x78] sm:$0xff] }
 0x316   : > { %3178 = vmatprep.subr.bf16.mxu0 %v3177_v52  ;;  %v2150_v52 = vld [vmem:[%s4064_s7 + $0x68] sm:$0xff]  ;;  %v3259_v56 = vpack.c.bf16 %v2152_v55, %v2151_v54 }
 0x317   : > { %v3256_v53 = vpack.c.bf16 %v2150_v52, %v2149_v51 }
 0x319   : > { %3180 = vmatpush3.bf16.msra.mxu0 %v3179_v58  ;;  %v2225_v58 = vld [vmem:[#allocation7 + $0x8] sm:$0xff] }
 0x31a   : > { %3182 = vmatprep.subr.bf16.mxu0 %v3181_v59  ;;  %v2226_v59 = vld [vmem:[#allocation7 + $0x10] sm:$0xff]  ;;  %v3262_v63 = vpack.c.bf16 %v2225_v58, %v2224_v57 }
 0x31b   : > { %v3265_v1 = vpack.c.bf16 %v2227_v0, %v2226_v59 }
 0x31c   : > { %3263 = vmatpush3.bf16.msra.mxu1 %v3262_v63 }
 0x31d   : > { %3184 = vmatpush3.bf16.msra.mxu0 %v3183_v3  ;;  %3264 = vmatprep.subr.bf16.mxu1 %v3556_v31  ;;  %v2229_v3 = vld [vmem:[#allocation7 + $0x28] sm:$0xff] }
 0x31e   : > { %3186 = vmatprep.subr.bf16.mxu0 %v3185_v4  ;;  %v3268_v4 = vpack.c.bf16 %v2229_v3, %v2228_v2 }
 0x320   : > { %3266 = vmatpush3.bf16.msra.mxu1 %v3265_v1 }
 0x321   : > { %3188 = vmatpush3.bf16.msra.mxu0 %v3187_v9  ;;  %3267 = vmatprep.subr.bf16.mxu1 %v3556_v31 }
 0x322   : > { %3190 = vmatprep.subr.bf16.mxu0 %v3189_v10  ;;  %v2234_v10 = vld [vmem:[#allocation7 + $0x50] sm:$0xff] }
 0x323   : > { %v3277_v12 = vpack.c.bf16 %v2235_v11, %v2234_v10 }
 0x324   : > { %3269 = vmatpush3.bf16.msra.mxu1 %v3268_v4 }
 0x325   : > { %3192 = vmatpush3.bf16.msra.mxu0 %v3191_v49  ;;  %3270 = vmatprep.subr.bf16.mxu1 %v3556_v31  ;;  %v3280_v49 = vpack.c.bf16 %v2237_v40, %v2236_v13 }
 0x326   : > { %3194 = vmatprep.subr.bf16.mxu0 %v3193_v14 }
 0x328   : > { %3272 = vmatpush3.bf16.msra.mxu1 %v3271_v8 }
 0x329   : > { %3196 = vmatpush3.bf16.msra.mxu0 %v3195_v18  ;;  %3273 = vmatprep.subr.bf16.mxu1 %v3556_v31 }
 0x32a   : > { %3198 = vmatprep.subr.bf16.mxu0 %v3197_v19  ;;  %v1587_v19 = vld [vmem:[%s4063_s6] sm:$0x1] }
 0x32d   : > { %3200 = vmatpush3.bf16.msra.mxu0 %v3199_v24 }
 0x32e   : > { %3202 = vmatprep.subr.bf16.mxu0 %v3201_v25 }
 0x331   : > { %3204 = vmatpush3.bf16.msra.mxu0 %v3203_v27 }
 0x332   : > { %3237 = vmatprep.subr.bf16.mxu0 %v3556_v31 }
 0x334   : > { %2019 = vmatmul.mubr.f32.vlgmr.msra.gmra.mrb[8].mxu0 %v1950_v60 }
 0x335   : > { %3239 = vmatpush3.bf16.msra.mxu0 %v3238_v32  ;;  %2831 = vmatprep.mubr.msk.f32.mxu0 %vm3557_vm5, %v3555_v34  ;;  %v2232_v34 = vld [vmem:[#allocation7 + $0x40] sm:$0xff]  ;;  %v2238_v32 = vld [vmem:[#allocation7 + $0x70] sm:$0xff] }
 0x336   : > { %3240 = vmatprep.subr.bf16.mxu0 %v3556_v31  ;;  %v3274_v9 = vpack.c.bf16 %v2233_v5, %v2232_v34 }
 0x338   : > { %3275 = vmatpush3.bf16.msra.mxu1 %v3274_v9 }
 0x339   : > { %3242 = vmatpush3.bf16.msra.mxu0 %v3241_v33  ;;  %3276 = vmatprep.subr.bf16.mxu1 %v3556_v31  ;;  %v3283_v33 = vpack.c.bf16 %v2239_v62, %v2238_v32 }
 0x33a   : > { %3243 = vmatprep.subr.bf16.mxu0 %v3556_v31 }
 0x33c   : > { %3278 = vmatpush3.bf16.msra.mxu1 %v3277_v12 }
 0x33d   : > { %3245 = vmatpush3.bf16.msra.mxu0 %v3244_v37  ;;  %3279 = vmatprep.subr.bf16.mxu1 %v3556_v31 }
 0x33e   : > { %3246 = vmatprep.subr.bf16.mxu0 %v3556_v31 }
 0x340   : > { %3281 = vmatpush3.bf16.msra.mxu1 %v3280_v49 }
 0x341   : > { %3248 = vmatpush3.bf16.msra.mxu0 %v3247_v38  ;;  %3282 = vmatprep.subr.bf16.mxu1 %v3556_v31  ;;  %v2240_v38 = vld [vmem:[%s4067_s10] sm:$0x1] }
 0x342   : > { %3249 = vmatprep.subr.bf16.mxu0 %v3556_v31 }
 0x344   : > { %3284 = vmatpush3.bf16.msra.mxu1 %v3283_v33 }
 0x345   : > { %3251 = vmatpush3.bf16.msra.mxu0 %v3250_v44 }
 0x346   : > { %3252 = vmatprep.subr.bf16.mxu0 %v3556_v31 }
 0x349   : > { %3254 = vmatpush3.bf16.msra.mxu0 %v3253_v50 }
 0x34a   : > { %3255 = vmatprep.subr.bf16.mxu0 %v3556_v31 }
 0x34d   : > { %3257 = vmatpush3.bf16.msra.mxu0 %v3256_v53 }
 0x34e   : > { %3258 = vmatprep.subr.bf16.mxu0 %v3556_v31 }
 0x351   : > { %3260 = vmatpush3.bf16.msra.mxu0 %v3259_v56 }
 0x3a7   : > { %v2556_v14 = vpop.f32.mrb[2].mxu0 }
 0x3a8   : > { %v2557_v15 = vpop.f32.mrb[3].mxu0 }
 0x3a9   : > { %v2558_v16 = vadd.f32 %v2557_v15, %v2556_v14 }
 0x3ab   : > { %v2696_v17 = vpop.f32.mrb[4].mxu1  ;;  %v1698_v22 = vadd.f32 %v2558_v16, %v1587_v19 }
 0x3ac   : > { %v2697_v61 = vpop.f32.mrb[5].mxu1 }
 0x3ad   : > { %v2698_v18 = vadd.f32 %v2697_v61, %v2696_v17 }
 0x3c7   : > { %v2591_v20 = vpop.f32.mrb[4].mxu0 }
 0x3c8   : > { %v2592_v21 = vpop.f32.mrb[5].mxu0 }
 0x3c9   : > { %v2593_v23 = vadd.f32 %v2592_v21, %v2591_v20 }
 0x3cb   : > { %v1808_v24 = vadd.f32 %v2593_v23, %v1698_v22 }
 0x3e7   : > { %v2626_v25 = vpop.f32.mrb[6].mxu0 }
 0x3e8   : > { %v2627_v26 = vpop.f32.mrb[7].mxu0 }
 0x3e9   : > { %v2628_v48 = vadd.f32 %v2627_v26, %v2626_v25 }
 0x3eb   : > { %v1916_v27 = vadd.f32 %v2628_v48, %v1808_v24 }
 0x407   : > { %v2661_v60 = vpop.f32.mrb[8].mxu0 }
 0x408   : > { %v2662_v28 = vpop.f32.mrb[9].mxu0 }
 0x409   : > { %v2663_v29 = vadd.f32 %v2662_v28, %v2661_v60 }
 0x40b   : > { %v2024_v30 = vadd.f32 %v2663_v29, %v1916_v27 }
 0x40d   : > { %v2136_v31 = vadd.f32 %v2698_v18, %v2024_v30 }
 0x40f   : > { %2832 = vmatmul.mubr.f32.vlgmr.msra.gmra.mrb[10].mxu0 %v2136_v31 }
 0x4e2   : > { %v2220_v36 = vpop.f32.mrb[10].mxu0 }
 0x4e3   : > { %v2221_v37 = vadd.f32 %v2220_v36, %v2153_v35  ;;  %v2833_v47 = vpop.f32.mrb[11].mxu0 }
 0x4e5   : > { %2867 = vmatmul.mubr.f32.vlgmr.msra.gmra.mrb[6].mxu1 %v2221_v37 }
 0x5b8   : > { %v2307_v39 = vpop.f32.mrb[6].mxu1 }
 0x5b9   : > { %v2308_v41 = vadd.f32 %v2307_v39, %v2240_v38  ;;  %v2868_v44 = vpop.f32.mrb[7].mxu1 }
 0x5bb   : > { %v2314_v45 = vsel %vm2313_vm6, %v2308_v41, -1e+30 }
 0x5bc   : > { %v2316_v46 = vsel %vm2315_vm7, %v2314_v45, -inf }
 0x5bd   : > { %2317 = vmax.xlane.f32.xlu0 %v2316_v46 }
 0x64a   : > { %v2318_v50 = vpop.xlane.xlu0 %2317 }
 0x64b   : > { %v2319_v51 = vsub.f32 %v2314_v45, %v2318_v50 }
 0x64d   : > { %v2320_v52 = vmul.f32 1.442695, %v2319_v51 }
 0x64f   : > { %3388 = vpow2.f32 %v2320_v52 }
 0x659   : > { %v3389_v53 = vpop.eup %3388 }
 0x65a   : > { %v2322_v42 = vsel %vm2313_vm6, %v3389_v53, 0.0 }
 0x65b   : > { %v2323_v54 = vsel %vm2315_vm7, %v2322_v42, 0.0 }
 0x65c   : > { %2324 = vadd.xlane.f32.xlu0 %v2323_v54 }
 0x6e9   : > { %v2325_v55 = vpop.xlane.xlu0 %2324 }
 0x6ea   : > { %3390 = vrcp.f32 %v2325_v55 }
 0x6f4   : > { %v3391_v56 = vpop.eup %3390 }
 0x6f5   : > { %v2327_v57 = vmul.f32 %v3391_v56, %v2322_v42 }
 0x6f7   : > { %2328 = vst [vmem:[%s422_s28] sm:$0x1] %v2327_v57 }
 0x6f8   : > { %3489 = shalt.err (!%p3486_p11)
}
 0x6f9   : > { %s3490_s20 = scalar_lea.hbm %s4015_s30, 16  ;;  %s3494_s14 = scalar_lea.hbm %s4068_s11, 32 }
 0x6fa   : > { %p3491_p5 = scmp.ne.s32.totalorder %s4015_s30, %s3490_s20  ;;  %p3495_p9 = scmp.lt.u32.totalorder %s4015_s30, %s4068_s11 }
 0x6fb   : > { %p3496_p10 = scmp.lt.u32.totalorder %s3494_s14, %s3490_s20  ;;  %p3498_p12 = scmp.lt.u32.totalorder %s3490_s20, %s4015_s30 }
 0x6fc   : > { %p3492_p0 = pnand %p3491_p5, %p4100_p1 }
 0x6fd   : > { %p3497_p13 = por %p3496_p10, %p3495_p9 }
 0x6fe   : > { %p3493_p6 = pneg %p3492_p0 }
 0x6ff   : > { %p3499_p2 = por %p3498_p12, %p3497_p13 }
 0x701   : > { %p3500_p3 = pnand %p3499_p2, %p3493_p6 }
 0x703   : > { %3503 = shalt.err (!%p3500_p3)
}
 0x704   : > { %3323 = dma.vmem_to_hbm [thread:$0]  (%p4100_p1), %s4017_s5, 16, %s4015_s30, %s2330_s17  }
 0x705 PF: > { %s4101_s15 = sld [smem:[#allocation14_spill]]  ;;  %s4102_s26 = sld [smem:[#allocation12_spill]] }
 0x706   : > { %s4103_s28 = sld [smem:[#allocation17_spill]] }
 0x70b   : > { %p3345_p4 = scmp.ge.s32.totalorder %s4101_s15, 2  ;;  %s2354_s22 = sand.u32 1, %s4102_s26  }
 0x70c   : > { %p4104_p7 = scmp.ne.s32.totalorder %s4103_s28, 0  ;;  %s2355_s13 = scalar_lea.sflag [#allocation4], %s2354_s22 }
 0x70e   : > { %p3336_p8 = pnand %p3345_p4, %p4104_p7 }
 0x710   : > { %3529 = dma.done.wait (!%p3336_p8), %s2355_s13, 16  }
 0x711   : > { %3531 = vsyncadd (!%p3336_p8), %s2355_s13, 4294967280  ;;  %s4105_s20 = sld [smem:[#allocation15_spill]]  ;;  %s4106_s29 = sld [smem:[#allocation13_spill]] }
 0x712   : > { %s4107_s19 = sld [smem:[#allocation16_spill]]  ;;  %s4108_s17 = smov %s3538_s18 }
 0x717   : > { %p23_p11 = scmp.ge.s32.totalorder %s4105_s20, 4   ;;  %s4109_s18 = smov %s4106_s29 }
 0x719   :  { %25 = sbr.rel (!%p23_p11) target bundleno = 7 (0x7), region = 136 }
 0x720   :  { %2359 = vsyncpa [#allocation3], 1 }
 0x721   :  { %2361 = vsyncpa [#allocation3 + $0x1], 1 }
 0x722   :  { %2362 = vsyncpa [#allocation6], 1 }
 0x723   :  { %2363 = vsyncpa [#allocation4], 1 }
 0x724   :  { %2365 = vsyncpa [#allocation4 + $0x1], 1 }

</bundles_post_ra>
